<compile_context>
chip_gen: v6e
topology: v6e:2x2x1
jax: 0.10.0
libtpu: 0.0.40
codegen_flags: <defaults>
</compile_context>

<pallas_src>
import functools

import jax
import jax.numpy as jnp
from jax.experimental import pallas as pl
from jax.experimental.pallas import tpu as pltpu


def _largest_divisor_leq(n, cap):
    cap = int(max(1, min(n, cap)))
    for d in range(cap, 0, -1):
        if n % d == 0:
            return d
    return 1


def _pick_channel_tile(C, W):
    """Largest lane-dense channel tile keeping one image row <= 16 vregs (f32)."""
    if C % 128 != 0:
        # TODO(synk): pad C up to a multiple of 128 for lane-dense stores when such
        # call sites appear (module default dim=768 is already a multiple of 128).
        return C
    best = 128
    t = 256
    while t <= C:
        if C % t == 0 and W * t <= 16384:
            best = t
        t += 128
    return best


def _pick_row_strip(H, W, TC, n_ct, B, itemsize):
    """Rows per strip: VMEM-bounded, divides H, and gives >= ~8 grid steps."""
    budget = 24 << 20                      # big-buffer budget (v7x has 64 MiB VMEM)
    row_bytes = W * TC * itemsize
    th_vmem = max(1, budget // (4 * row_bytes) - 1)   # 2x(strip+2) scratch + 2x out
    min_steps = 8                           # feed both v7x TCs / hide DMA prologue
    need_nh = min(H, -(-min_steps // max(1, n_ct * B)))
    th_steps = max(1, -(-H // need_nh))
    return _largest_divisor_leq(H, min(th_vmem, th_steps))


def _pick_row_chunk(TH, W, TC):
    """Output rows accumulated at once: keep f32 acc + one window in vregs."""
    return _largest_divisor_leq(TH, max(1, 8192 // (W * TC)))


def _make_dwconv_kernel(H, W, TH, TC, RB, n_h):
    n_chunks = TH // RB

    def kernel(x_hbm, w_ref, b_ref, o_ref, xp_ref, sem_ref):
        # x_hbm : (B, H, W, C)     full input, left in HBM (memory_space=pl.ANY)
        # w_ref : (3, 3, TC)       depthwise taps for this channel tile (VMEM)
        # b_ref : (1, TC)          bias (VMEM)
        # o_ref : (1, TH, W, TC)   output block (BlockSpec-pipelined)
        # xp_ref: (2, TH+2, W, TC) double-buffered row strip + vertical halo rows
        # sem_ref: (3, 2)          DMA sems: (body, top halo, bottom halo) x slot
        c = pl.program_id(0)
        b = pl.program_id(1)
        h = pl.program_id(2)
        slot = h % 2
        c0 = c * TC

        def strip_copies(h_idx, sl):
            row0 = h_idx * TH
            top = jnp.maximum(row0 - 1, 0)       # clamped; zeroed below if first strip
            bot = jnp.minimum(row0 + TH, H - 1)  # clamped; zeroed below if last strip
            return (
                pltpu.make_async_copy(
                    x_hbm.at[b, pl.ds(row0, TH), :, pl.ds(c0, TC)],
                    xp_ref.at[sl, pl.ds(1, TH)], sem_ref.at[0, sl]),
                pltpu.make_async_copy(
                    x_hbm.at[b, pl.ds(top, 1), :, pl.ds(c0, TC)],
                    xp_ref.at[sl, pl.ds(0, 1)], sem_ref.at[1, sl]),
                pltpu.make_async_copy(
                    x_hbm.at[b, pl.ds(bot, 1), :, pl.ds(c0, TC)],
                    xp_ref.at[sl, pl.ds(TH + 1, 1)], sem_ref.at[2, sl]),
            )

        # Prime: the first strip of every (c, b) has no prefetch in flight yet.
        @pl.when(h == 0)
        def _():
            for cp in strip_copies(h, slot):
                cp.start()

        # Prefetch the next strip of the same (c, b) into the other slot.  The h
        # axis is "arbitrary", so all strips of one (c, b) run in order on one
        # core regardless of how the parallel (c, b) axes are sharded (megacore).
        @pl.when(h + 1 < n_h)
        def _():
            for cp in strip_copies(h + 1, 1 - slot):
                cp.start()

        # Wait for this strip's data (issued above if h == 0, else at step h-1).
        for cp in strip_copies(h, slot):
            cp.wait()

        # conv padding=1 in H: zero the halo rows that fall outside the image.
        dt = xp_ref.dtype
        @pl.when(h == 0)
        def _():
            xp_ref[slot, pl.ds(0, 1), :, :] = jnp.zeros((1, W, TC), dt)

        @pl.when(h == n_h - 1)
        def _():
            xp_ref[slot, pl.ds(TH + 1, 1), :, :] = jnp.zeros((1, W, TC), dt)

        wf = w_ref[...].astype(jnp.float32)     # (3, 3, TC)
        bf = b_ref[0, :].astype(jnp.float32)    # (TC,)

        def compute_rows(r0):
            # Interior output columns [1, W-1): every tap reads in-bounds, so the
            # 9 windows come straight off the scratch ref as shifted vector loads
            # and the only big live value is the bounded (RB, W-2, TC) f32 acc.
            acc = jnp.zeros((RB, W - 2, TC), jnp.float32)
            for dh in range(3):
                for dw in range(3):
                    win = xp_ref[slot, pl.ds(r0 + dh, RB), pl.ds(dw, W - 2), :]
                    acc = acc + win.astype(jnp.float32) * wf[dh, dw]
            o_ref[0, pl.ds(r0, RB), pl.ds(1, W - 2), :] = (
                acc + bf).astype(o_ref.dtype)

            # Border columns c = 0 and c = W-1 (conv padding=1 in W): tiny work.
            acc_l = jnp.zeros((RB, 1, TC), jnp.float32)
            acc_r = jnp.zeros((RB, 1, TC), jnp.float32)
            for dh in range(3):
                col0 = xp_ref[slot, pl.ds(r0 + dh, RB), pl.ds(0, 1), :]
                col1 = xp_ref[slot, pl.ds(r0 + dh, RB), pl.ds(1, 1), :]
                cm2 = xp_ref[slot, pl.ds(r0 + dh, RB), pl.ds(W - 2, 1), :]
                cm1 = xp_ref[slot, pl.ds(r0 + dh, RB), pl.ds(W - 1, 1), :]
                acc_l = (acc_l + col0.astype(jnp.float32) * wf[dh, 1]
                         + col1.astype(jnp.float32) * wf[dh, 2])
                acc_r = (acc_r + cm2.astype(jnp.float32) * wf[dh, 0]
                         + cm1.astype(jnp.float32) * wf[dh, 1])
            o_ref[0, pl.ds(r0, RB), pl.ds(0, 1), :] = (acc_l + bf).astype(o_ref.dtype)
            o_ref[0, pl.ds(r0, RB), pl.ds(W - 1, 1), :] = (acc_r + bf).astype(o_ref.dtype)

        if n_chunks == 1:
            compute_rows(0)
        else:
            @pl.loop(0, n_chunks)
            def _(ci):
                compute_rows(pl.multiple_of(ci * RB, RB))

    return kernel


@functools.partial(jax.jit, static_argnames=("H", "W", "channel_tile"))
def dwconv_forward(x, weight_hwc, bias, H, W, channel_tile=None):
    """x: (B, N, C) with N == H*W; weight_hwc: (3, 3, C); bias: (C,). Returns (B, N, C)."""
    B, N, C = x.shape
    assert N == H * W, "token count must equal H*W"
    assert W >= 3, "W < 3 not supported"  # TODO(synk): add tiny-W fallback if needed

    if channel_tile is None:
        TC = _pick_channel_tile(C, W)
    else:
        assert C % channel_tile == 0
        TC = channel_tile
    n_ct = C // TC

    itemsize = x.dtype.itemsize
    TH = _pick_row_strip(H, W, TC, n_ct, B, itemsize)
    n_h = H // TH
    RB = _pick_row_chunk(TH, W, TC)

    # (B, N, C) -> (B, H, W, C): same element mapping as PyTorch transpose+view.
    x_nhwc = x.reshape(B, H, W, C)
    bias2d = bias.reshape(1, C)

    # TODO(synk): for bf16 activations, cast once into an f32 scratch during the
    # DMA'd strip instead of per-tap casts (per-generation bf16 I/O tuning).
    vmem_need = (2 * (TH + 2) * W * TC * itemsize      # halo scratch, both slots
                 + 2 * TH * W * TC * itemsize          # double-buffered output blocks
                 + 2 * RB * W * TC * 4                 # live f32 acc + tap window
                 + 4 * (9 + 1) * TC * itemsize         # weights + bias blocks
                 + (1 << 20))                          # slack
    vmem_limit = int(min(48 << 20, max(vmem_need * 5 // 4, 8 << 20)))

    kernel = _make_dwconv_kernel(H, W, TH, TC, RB, n_h)

    out_nhwc = pl.pallas_call(
        kernel,
        out_shape=jax.ShapeDtypeStruct((B, H, W, C), x.dtype),
        grid_spec=pltpu.PrefetchScalarGridSpec(
            num_scalar_prefetch=0,
            grid=(n_ct, B, n_h),
            in_specs=[
                pl.BlockSpec(memory_space=pl.ANY),                     # x stays in HBM
                pl.BlockSpec((3, 3, TC), lambda c, b, h: (0, 0, c)),   # taps
                pl.BlockSpec((1, TC), lambda c, b, h: (0, c)),         # bias
            ],
            out_specs=pl.BlockSpec((1, TH, W, TC), lambda c, b, h: (b, h, 0, c)),
            scratch_shapes=[
                pltpu.VMEM((2, TH + 2, W, TC), x.dtype),
                pltpu.SemaphoreType.DMA((3, 2)),
            ],
        ),
        compiler_params=pltpu.CompilerParams(
            dimension_semantics=("parallel", "parallel", "arbitrary"),
            vmem_limit_bytes=vmem_limit,
        ),
    )(x_nhwc, weight_hwc, bias2d)

    return out_nhwc.reshape(B, N, C)


def _reference(x, weight_hwc, bias, H, W):
    """Pure-JAX reference matching nn.Conv2d(C, C, 3, 1, 1, groups=C, bias=True)."""
    B, N, C = x.shape
    x_nchw = x.reshape(B, H, W, C).transpose(0, 3, 1, 2)           # (B, C, H, W)
    w_oihw = weight_hwc.transpose(2, 0, 1)[:, None, :, :]          # (C, 1, 3, 3)
    y = jax.lax.conv_general_dilated(
        x_nchw, w_oihw, window_strides=(1, 1), padding=((1, 1), (1, 1)),
        feature_group_count=C, dimension_numbers=("NCHW", "OIHW", "NCHW"),
        precision=jax.lax.Precision.HIGHEST)
    y = y + bias[None, :, None, None]
    return y.reshape(B, C, N).transpose(0, 2, 1)                   # (B, N, C)


if __name__ == "__main__":
    key = jax.random.PRNGKey(0)

    def run_case(case_key, B, C, Hs, Ws, channel_tile=None):
        kx, kw, kb = jax.random.split(case_key, 3)
        N = Hs * Ws
        x = jax.random.normal(kx, (B, N, C), dtype=jnp.float32)
        # Deterministic Conv2d-style init (kaiming-uniform-ish bound for fan_in=9).
        bound = 1.0 / (9.0 ** 0.5)
        weight_hwc = jax.random.uniform(kw, (3, 3, C), jnp.float32, -bound, bound)
        bias = jax.random.uniform(kb, (C,), jnp.float32, -bound, bound)

        out = dwconv_forward(x, weight_hwc, bias, Hs, Ws, channel_tile=channel_tile)
        out = jax.block_until_ready(out)

        ref = _reference(x, weight_hwc, bias, Hs, Ws)
        assert out.shape == (B, N, C)
        assert jnp.allclose(out, ref, atol=1e-4, rtol=1e-4), "mismatch vs reference"

    k1, k2 = jax.random.split(key)
    # Primary: single channel tile (contiguous strip DMA), 4 row strips per image.
    run_case(k1, B=2, C=256, Hs=16, Ws=16)
    # Channel-tiled path (TC < C): strided channel DMA + per-tile weight/bias blocks.
    run_case(k2, B=2, C=256, Hs=16, Ws=16, channel_tile=128)

    print("KERNEL_OK")
</pallas_src>

<mosaic_0001>
module attributes {stable_mosaic.version = 11 : i64} {
  func.func @kernel(%arg0: i32, %arg1: i32, %arg2: i32, %arg3: memref<2x16x16x256xf32, #tpu.memory_space<any>>, %arg4: memref<3x3x256xf32, #tpu.memory_space<vmem>>, %arg5: memref<1x256xf32, #tpu.memory_space<vmem>>, %arg6: memref<1x4x16x256xf32, #tpu.memory_space<vmem>>, %arg7: memref<2x6x16x256xf32, #tpu.memory_space<vmem>>, %arg8: memref<3x2x!tpu.dma_semaphore, #tpu.memory_space<semaphore_mem>>) attributes {dimension_semantics = [#tpu.dimension_semantics<parallel>, #tpu.dimension_semantics<parallel>, #tpu.dimension_semantics<arbitrary>], iteration_bounds = array<i64: 1, 2, 4>, scalar_prefetch = 0 : i64, scratch_operands = 2 : i64, tpu.core_type = #tpu.core_type<tc>, window_params = [{}, {transform_indices = @transform_1, window_bounds = array<i64: 3, 3, 256>}, {transform_indices = @transform_2, window_bounds = array<i64: 1, 256>}, {transform_indices = @transform_3, window_bounds = array<i64: 1, 4, 16, 256>}]} {
    %c2_i32 = arith.constant 2 : i32
    %c0_i32 = arith.constant 0 : i32
    %0 = arith.cmpi eq, %c2_i32, %c0_i32 : i32
    %c1_i32 = arith.constant 1 : i32
    %1 = arith.select %0, %c1_i32, %c2_i32 : i32
    %2 = arith.remsi %arg2, %1 : i32
    %c0_i32_0 = arith.constant 0 : i32
    %3 = arith.cmpi ne, %2, %c0_i32_0 : i32
    %c0_i32_1 = arith.constant 0 : i32
    %4 = arith.cmpi slt, %2, %c0_i32_1 : i32
    %c0_i32_2 = arith.constant 0 : i32
    %5 = arith.cmpi slt, %1, %c0_i32_2 : i32
    %6 = arith.xori %4, %5 : i1
    %7 = arith.andi %6, %3 : i1
    %8 = arith.addi %2, %1 : i32
    %9 = arith.select %7, %8, %2 : i32
    %c256_i32 = arith.constant 256 : i32
    %10 = arith.muli %arg0, %c256_i32 : i32
    %c0_i32_3 = arith.constant 0 : i32
    %11 = arith.cmpi eq, %arg2, %c0_i32_3 : i32
    %12 = arith.extui %11 : i1 to i32
    %c0_i32_4 = arith.constant 0 : i32
    %13 = arith.cmpi ne, %12, %c0_i32_4 : i32
    scf.if %13 {
      %c4_i32_36 = arith.constant 4 : i32
      %51 = arith.muli %arg2, %c4_i32_36 : i32
      %c1_i32_37 = arith.constant 1 : i32
      %52 = arith.subi %51, %c1_i32_37 : i32
      %c0_i32_38 = arith.constant 0 : i32
      %53 = arith.maxsi %52, %c0_i32_38 : i32
      %c4_i32_39 = arith.constant 4 : i32
      %54 = arith.addi %51, %c4_i32_39 : i32
      %c15_i32_40 = arith.constant 15 : i32
      %55 = arith.minsi %54, %c15_i32_40 : i32
      %c0_i32_41 = arith.constant 0 : i32
      %c0_i32_42 = arith.constant 0 : i32
      %56 = tpu.memref_slice %arg3[%arg1, %51, %c0_i32_42, %10] : memref<2x16x16x256xf32, #tpu.memory_space<any>> -> memref<1x4x16x256xf32, #tpu.memory_space<any>>
      %57 = tpu.memref_squeeze %56 : memref<1x4x16x256xf32, #tpu.memory_space<any>> -> memref<4x16x256xf32, #tpu.memory_space<any>>
      %c1_i32_43 = arith.constant 1 : i32
      %c0_i32_44 = arith.constant 0 : i32
      %c0_i32_45 = arith.constant 0 : i32
      %58 = tpu.memref_slice %arg7[%9, %c1_i32_43, %c0_i32_44, %c0_i32_45] : memref<2x6x16x256xf32, #tpu.memory_space<vmem>> -> memref<1x4x16x256xf32, #tpu.memory_space<vmem>>
      %59 = tpu.memref_squeeze %58 : memref<1x4x16x256xf32, #tpu.memory_space<vmem>> -> memref<4x16x256xf32, #tpu.memory_space<vmem>>
      %60 = tpu.memref_slice %arg8[%c0_i32_41, %9] : memref<3x2x!tpu.dma_semaphore, #tpu.memory_space<semaphore_mem>> -> memref<1x1x!tpu.dma_semaphore, #tpu.memory_space<semaphore_mem>>
      %61 = tpu.memref_squeeze %60 : memref<1x1x!tpu.dma_semaphore, #tpu.memory_space<semaphore_mem>> -> memref<!tpu.dma_semaphore, #tpu.memory_space<semaphore_mem>>
      tpu.enqueue_dma source(%57 : memref<4x16x256xf32, #tpu.memory_space<any>>) target(%59 : memref<4x16x256xf32, #tpu.memory_space<vmem>>) target_semaphore(%61 : memref<!tpu.dma_semaphore, #tpu.memory_space<semaphore_mem>>)
      %c1_i32_46 = arith.constant 1 : i32
      %c0_i32_47 = arith.constant 0 : i32
      %62 = tpu.memref_slice %arg3[%arg1, %53, %c0_i32_47, %10] : memref<2x16x16x256xf32, #tpu.memory_space<any>> -> memref<1x1x16x256xf32, #tpu.memory_space<any>>
      %63 = tpu.memref_squeeze %62 : memref<1x1x16x256xf32, #tpu.memory_space<any>> -> memref<1x16x256xf32, #tpu.memory_space<any>>
      %c0_i32_48 = arith.constant 0 : i32
      %c0_i32_49 = arith.constant 0 : i32
      %c0_i32_50 = arith.constant 0 : i32
      %64 = tpu.memref_slice %arg7[%9, %c0_i32_48, %c0_i32_49, %c0_i32_50] : memref<2x6x16x256xf32, #tpu.memory_space<vmem>> -> memref<1x1x16x256xf32, #tpu.memory_space<vmem>>
      %65 = tpu.memref_squeeze %64 : memref<1x1x16x256xf32, #tpu.memory_space<vmem>> -> memref<1x16x256xf32, #tpu.memory_space<vmem>>
      %66 = tpu.memref_slice %arg8[%c1_i32_46, %9] : memref<3x2x!tpu.dma_semaphore, #tpu.memory_space<semaphore_mem>> -> memref<1x1x!tpu.dma_semaphore, #tpu.memory_space<semaphore_mem>>
      %67 = tpu.memref_squeeze %66 : memref<1x1x!tpu.dma_semaphore, #tpu.memory_space<semaphore_mem>> -> memref<!tpu.dma_semaphore, #tpu.memory_space<semaphore_mem>>
      tpu.enqueue_dma source(%63 : memref<1x16x256xf32, #tpu.memory_space<any>>) target(%65 : memref<1x16x256xf32, #tpu.memory_space<vmem>>) target_semaphore(%67 : memref<!tpu.dma_semaphore, #tpu.memory_space<semaphore_mem>>)
      %c2_i32_51 = arith.constant 2 : i32
      %c0_i32_52 = arith.constant 0 : i32
      %68 = tpu.memref_slice %arg3[%arg1, %55, %c0_i32_52, %10] : memref<2x16x16x256xf32, #tpu.memory_space<any>> -> memref<1x1x16x256xf32, #tpu.memory_space<any>>
      %69 = tpu.memref_squeeze %68 : memref<1x1x16x256xf32, #tpu.memory_space<any>> -> memref<1x16x256xf32, #tpu.memory_space<any>>
      %c5_i32_53 = arith.constant 5 : i32
      %c0_i32_54 = arith.constant 0 : i32
      %c0_i32_55 = arith.constant 0 : i32
      %70 = tpu.memref_slice %arg7[%9, %c5_i32_53, %c0_i32_54, %c0_i32_55] : memref<2x6x16x256xf32, #tpu.memory_space<vmem>> -> memref<1x1x16x256xf32, #tpu.memory_space<vmem>>
      %71 = tpu.memref_squeeze %70 : memref<1x1x16x256xf32, #tpu.memory_space<vmem>> -> memref<1x16x256xf32, #tpu.memory_space<vmem>>
      %72 = tpu.memref_slice %arg8[%c2_i32_51, %9] : memref<3x2x!tpu.dma_semaphore, #tpu.memory_space<semaphore_mem>> -> memref<1x1x!tpu.dma_semaphore, #tpu.memory_space<semaphore_mem>>
      %73 = tpu.memref_squeeze %72 : memref<1x1x!tpu.dma_semaphore, #tpu.memory_space<semaphore_mem>> -> memref<!tpu.dma_semaphore, #tpu.memory_space<semaphore_mem>>
      tpu.enqueue_dma source(%69 : memref<1x16x256xf32, #tpu.memory_space<any>>) target(%71 : memref<1x16x256xf32, #tpu.memory_space<vmem>>) target_semaphore(%73 : memref<!tpu.dma_semaphore, #tpu.memory_space<semaphore_mem>>)
    } else {
    }
    %c1_i32_5 = arith.constant 1 : i32
    %14 = arith.addi %arg2, %c1_i32_5 : i32
    %c4_i32 = arith.constant 4 : i32
    %15 = arith.cmpi slt, %14, %c4_i32 : i32
    %16 = arith.extui %15 : i1 to i32
    %c0_i32_6 = arith.constant 0 : i32
    %17 = arith.cmpi ne, %16, %c0_i32_6 : i32
    scf.if %17 {
      %c1_i32_36 = arith.constant 1 : i32
      %51 = arith.addi %arg2, %c1_i32_36 : i32
      %c1_i32_37 = arith.constant 1 : i32
      %52 = arith.subi %c1_i32_37, %9 : i32
      %c4_i32_38 = arith.constant 4 : i32
      %53 = arith.muli %51, %c4_i32_38 : i32
      %c1_i32_39 = arith.constant 1 : i32
      %54 = arith.subi %53, %c1_i32_39 : i32
      %c0_i32_40 = arith.constant 0 : i32
      %55 = arith.maxsi %54, %c0_i32_40 : i32
      %c4_i32_41 = arith.constant 4 : i32
      %56 = arith.addi %53, %c4_i32_41 : i32
      %c15_i32_42 = arith.constant 15 : i32
      %57 = arith.minsi %56, %c15_i32_42 : i32
      %c0_i32_43 = arith.constant 0 : i32
      %c0_i32_44 = arith.constant 0 : i32
      %58 = tpu.memref_slice %arg3[%arg1, %53, %c0_i32_44, %10] : memref<2x16x16x256xf32, #tpu.memory_space<any>> -> memref<1x4x16x256xf32, #tpu.memory_space<any>>
      %59 = tpu.memref_squeeze %58 : memref<1x4x16x256xf32, #tpu.memory_space<any>> -> memref<4x16x256xf32, #tpu.memory_space<any>>
      %c1_i32_45 = arith.constant 1 : i32
      %c0_i32_46 = arith.constant 0 : i32
      %c0_i32_47 = arith.constant 0 : i32
      %60 = tpu.memref_slice %arg7[%52, %c1_i32_45, %c0_i32_46, %c0_i32_47] : memref<2x6x16x256xf32, #tpu.memory_space<vmem>> -> memref<1x4x16x256xf32, #tpu.memory_space<vmem>>
      %61 = tpu.memref_squeeze %60 : memref<1x4x16x256xf32, #tpu.memory_space<vmem>> -> memref<4x16x256xf32, #tpu.memory_space<vmem>>
      %62 = tpu.memref_slice %arg8[%c0_i32_43, %52] : memref<3x2x!tpu.dma_semaphore, #tpu.memory_space<semaphore_mem>> -> memref<1x1x!tpu.dma_semaphore, #tpu.memory_space<semaphore_mem>>
      %63 = tpu.memref_squeeze %62 : memref<1x1x!tpu.dma_semaphore, #tpu.memory_space<semaphore_mem>> -> memref<!tpu.dma_semaphore, #tpu.memory_space<semaphore_mem>>
      tpu.enqueue_dma source(%59 : memref<4x16x256xf32, #tpu.memory_space<any>>) target(%61 : memref<4x16x256xf32, #tpu.memory_space<vmem>>) target_semaphore(%63 : memref<!tpu.dma_semaphore, #tpu.memory_space<semaphore_mem>>)
      %c1_i32_48 = arith.constant 1 : i32
      %c0_i32_49 = arith.constant 0 : i32
      %64 = tpu.memref_slice %arg3[%arg1, %55, %c0_i32_49, %10] : memref<2x16x16x256xf32, #tpu.memory_space<any>> -> memref<1x1x16x256xf32, #tpu.memory_space<any>>
      %65 = tpu.memref_squeeze %64 : memref<1x1x16x256xf32, #tpu.memory_space<any>> -> memref<1x16x256xf32, #tpu.memory_space<any>>
      %c0_i32_50 = arith.constant 0 : i32
      %c0_i32_51 = arith.constant 0 : i32
      %c0_i32_52 = arith.constant 0 : i32
      %66 = tpu.memref_slice %arg7[%52, %c0_i32_50, %c0_i32_51, %c0_i32_52] : memref<2x6x16x256xf32, #tpu.memory_space<vmem>> -> memref<1x1x16x256xf32, #tpu.memory_space<vmem>>
      %67 = tpu.memref_squeeze %66 : memref<1x1x16x256xf32, #tpu.memory_space<vmem>> -> memref<1x16x256xf32, #tpu.memory_space<vmem>>
      %68 = tpu.memref_slice %arg8[%c1_i32_48, %52] : memref<3x2x!tpu.dma_semaphore, #tpu.memory_space<semaphore_mem>> -> memref<1x1x!tpu.dma_semaphore, #tpu.memory_space<semaphore_mem>>
      %69 = tpu.memref_squeeze %68 : memref<1x1x!tpu.dma_semaphore, #tpu.memory_space<semaphore_mem>> -> memref<!tpu.dma_semaphore, #tpu.memory_space<semaphore_mem>>
      tpu.enqueue_dma source(%65 : memref<1x16x256xf32, #tpu.memory_space<any>>) target(%67 : memref<1x16x256xf32, #tpu.memory_space<vmem>>) target_semaphore(%69 : memref<!tpu.dma_semaphore, #tpu.memory_space<semaphore_mem>>)
      %c2_i32_53 = arith.constant 2 : i32
      %c0_i32_54 = arith.constant 0 : i32
      %70 = tpu.memref_slice %arg3[%arg1, %57, %c0_i32_54, %10] : memref<2x16x16x256xf32, #tpu.memory_space<any>> -> memref<1x1x16x256xf32, #tpu.memory_space<any>>
      %71 = tpu.memref_squeeze %70 : memref<1x1x16x256xf32, #tpu.memory_space<any>> -> memref<1x16x256xf32, #tpu.memory_space<any>>
      %c5_i32_55 = arith.constant 5 : i32
      %c0_i32_56 = arith.constant 0 : i32
      %c0_i32_57 = arith.constant 0 : i32
      %72 = tpu.memref_slice %arg7[%52, %c5_i32_55, %c0_i32_56, %c0_i32_57] : memref<2x6x16x256xf32, #tpu.memory_space<vmem>> -> memref<1x1x16x256xf32, #tpu.memory_space<vmem>>
      %73 = tpu.memref_squeeze %72 : memref<1x1x16x256xf32, #tpu.memory_space<vmem>> -> memref<1x16x256xf32, #tpu.memory_space<vmem>>
      %74 = tpu.memref_slice %arg8[%c2_i32_53, %52] : memref<3x2x!tpu.dma_semaphore, #tpu.memory_space<semaphore_mem>> -> memref<1x1x!tpu.dma_semaphore, #tpu.memory_space<semaphore_mem>>
      %75 = tpu.memref_squeeze %74 : memref<1x1x!tpu.dma_semaphore, #tpu.memory_space<semaphore_mem>> -> memref<!tpu.dma_semaphore, #tpu.memory_space<semaphore_mem>>
      tpu.enqueue_dma source(%71 : memref<1x16x256xf32, #tpu.memory_space<any>>) target(%73 : memref<1x16x256xf32, #tpu.memory_space<vmem>>) target_semaphore(%75 : memref<!tpu.dma_semaphore, #tpu.memory_space<semaphore_mem>>)
    } else {
    }
    %c4_i32_7 = arith.constant 4 : i32
    %18 = arith.muli %arg2, %c4_i32_7 : i32
    %c1_i32_8 = arith.constant 1 : i32
    %19 = arith.subi %18, %c1_i32_8 : i32
    %c0_i32_9 = arith.constant 0 : i32
    %20 = arith.maxsi %19, %c0_i32_9 : i32
    %c4_i32_10 = arith.constant 4 : i32
    %21 = arith.addi %18, %c4_i32_10 : i32
    %c15_i32 = arith.constant 15 : i32
    %22 = arith.minsi %21, %c15_i32 : i32
    %c0_i32_11 = arith.constant 0 : i32
    %c0_i32_12 = arith.constant 0 : i32
    %23 = tpu.memref_slice %arg3[%arg1, %18, %c0_i32_12, %10] : memref<2x16x16x256xf32, #tpu.memory_space<any>> -> memref<1x4x16x256xf32, #tpu.memory_space<any>>
    %24 = tpu.memref_squeeze %23 : memref<1x4x16x256xf32, #tpu.memory_space<any>> -> memref<4x16x256xf32, #tpu.memory_space<any>>
    %c1_i32_13 = arith.constant 1 : i32
    %c0_i32_14 = arith.constant 0 : i32
    %c0_i32_15 = arith.constant 0 : i32
    %25 = tpu.memref_slice %arg7[%9, %c1_i32_13, %c0_i32_14, %c0_i32_15] : memref<2x6x16x256xf32, #tpu.memory_space<vmem>> -> memref<1x4x16x256xf32, #tpu.memory_space<vmem>>
    %26 = tpu.memref_squeeze %25 : memref<1x4x16x256xf32, #tpu.memory_space<vmem>> -> memref<4x16x256xf32, #tpu.memory_space<vmem>>
    %27 = tpu.memref_slice %arg8[%c0_i32_11, %9] : memref<3x2x!tpu.dma_semaphore, #tpu.memory_space<semaphore_mem>> -> memref<1x1x!tpu.dma_semaphore, #tpu.memory_space<semaphore_mem>>
    %28 = tpu.memref_squeeze %27 : memref<1x1x!tpu.dma_semaphore, #tpu.memory_space<semaphore_mem>> -> memref<!tpu.dma_semaphore, #tpu.memory_space<semaphore_mem>>
    tpu.wait_dma2 semaphore(%28 : memref<!tpu.dma_semaphore, #tpu.memory_space<semaphore_mem>>) src(%24 : memref<4x16x256xf32, #tpu.memory_space<any>>) dst(%26 : memref<4x16x256xf32, #tpu.memory_space<vmem>>)
    %c1_i32_16 = arith.constant 1 : i32
    %c0_i32_17 = arith.constant 0 : i32
    %29 = tpu.memref_slice %arg3[%arg1, %20, %c0_i32_17, %10] : memref<2x16x16x256xf32, #tpu.memory_space<any>> -> memref<1x1x16x256xf32, #tpu.memory_space<any>>
    %30 = tpu.memref_squeeze %29 : memref<1x1x16x256xf32, #tpu.memory_space<any>> -> memref<1x16x256xf32, #tpu.memory_space<any>>
    %c0_i32_18 = arith.constant 0 : i32
    %c0_i32_19 = arith.constant 0 : i32
    %c0_i32_20 = arith.constant 0 : i32
    %31 = tpu.memref_slice %arg7[%9, %c0_i32_18, %c0_i32_19, %c0_i32_20] : memref<2x6x16x256xf32, #tpu.memory_space<vmem>> -> memref<1x1x16x256xf32, #tpu.memory_space<vmem>>
    %32 = tpu.memref_squeeze %31 : memref<1x1x16x256xf32, #tpu.memory_space<vmem>> -> memref<1x16x256xf32, #tpu.memory_space<vmem>>
    %33 = tpu.memref_slice %arg8[%c1_i32_16, %9] : memref<3x2x!tpu.dma_semaphore, #tpu.memory_space<semaphore_mem>> -> memref<1x1x!tpu.dma_semaphore, #tpu.memory_space<semaphore_mem>>
    %34 = tpu.memref_squeeze %33 : memref<1x1x!tpu.dma_semaphore, #tpu.memory_space<semaphore_mem>> -> memref<!tpu.dma_semaphore, #tpu.memory_space<semaphore_mem>>
    tpu.wait_dma2 semaphore(%34 : memref<!tpu.dma_semaphore, #tpu.memory_space<semaphore_mem>>) src(%30 : memref<1x16x256xf32, #tpu.memory_space<any>>) dst(%32 : memref<1x16x256xf32, #tpu.memory_space<vmem>>)
    %c2_i32_21 = arith.constant 2 : i32
    %c0_i32_22 = arith.constant 0 : i32
    %35 = tpu.memref_slice %arg3[%arg1, %22, %c0_i32_22, %10] : memref<2x16x16x256xf32, #tpu.memory_space<any>> -> memref<1x1x16x256xf32, #tpu.memory_space<any>>
    %36 = tpu.memref_squeeze %35 : memref<1x1x16x256xf32, #tpu.memory_space<any>> -> memref<1x16x256xf32, #tpu.memory_space<any>>
    %c5_i32 = arith.constant 5 : i32
    %c0_i32_23 = arith.constant 0 : i32
    %c0_i32_24 = arith.constant 0 : i32
    %37 = tpu.memref_slice %arg7[%9, %c5_i32, %c0_i32_23, %c0_i32_24] : memref<2x6x16x256xf32, #tpu.memory_space<vmem>> -> memref<1x1x16x256xf32, #tpu.memory_space<vmem>>
    %38 = tpu.memref_squeeze %37 : memref<1x1x16x256xf32, #tpu.memory_space<vmem>> -> memref<1x16x256xf32, #tpu.memory_space<vmem>>
    %39 = tpu.memref_slice %arg8[%c2_i32_21, %9] : memref<3x2x!tpu.dma_semaphore, #tpu.memory_space<semaphore_mem>> -> memref<1x1x!tpu.dma_semaphore, #tpu.memory_space<semaphore_mem>>
    %40 = tpu.memref_squeeze %39 : memref<1x1x!tpu.dma_semaphore, #tpu.memory_space<semaphore_mem>> -> memref<!tpu.dma_semaphore, #tpu.memory_space<semaphore_mem>>
    tpu.wait_dma2 semaphore(%40 : memref<!tpu.dma_semaphore, #tpu.memory_space<semaphore_mem>>) src(%36 : memref<1x16x256xf32, #tpu.memory_space<any>>) dst(%38 : memref<1x16x256xf32, #tpu.memory_space<vmem>>)
    %c0_i32_25 = arith.constant 0 : i32
    %41 = arith.cmpi eq, %arg2, %c0_i32_25 : i32
    %42 = arith.extui %41 : i1 to i32
    %c0_i32_26 = arith.constant 0 : i32
    %43 = arith.cmpi ne, %42, %c0_i32_26 : i32
    scf.if %43 {
      %cst = arith.constant 0.000000e+00 : f32
      %51 = vector.broadcast %cst : f32 to vector<1x16x256xf32>
      %52 = arith.index_cast %9 : i32 to index
      %c0_36 = arith.constant 0 : index
      %c0_37 = arith.constant 0 : index
      %c0_38 = arith.constant 0 : index
      %53 = vector.load %arg7[%52, %c0_36, %c0_37, %c0_38] : memref<2x6x16x256xf32, #tpu.memory_space<vmem>>, vector<1x1x16x256xf32>
      %54 = vector.shape_cast %53 : vector<1x1x16x256xf32> to vector<1x16x256xf32>
      %55 = vector.shape_cast %51 : vector<1x16x256xf32> to vector<1x1x16x256xf32>
      tpu.vector_store %arg7[%52, %c0_36, %c0_37, %c0_38], %55 {strides = array<i32>} : memref<2x6x16x256xf32, #tpu.memory_space<vmem>>, vector<1x1x16x256xf32>,
    } else {
    }
    %c3_i32 = arith.constant 3 : i32
    %44 = arith.cmpi eq, %arg2, %c3_i32 : i32
    %45 = arith.extui %44 : i1 to i32
    %c0_i32_27 = arith.constant 0 : i32
    %46 = arith.cmpi ne, %45, %c0_i32_27 : i32
    scf.if %46 {
      %cst = arith.constant 0.000000e+00 : f32
      %51 = vector.broadcast %cst : f32 to vector<1x16x256xf32>
      %52 = arith.index_cast %9 : i32 to index
      %c5 = arith.constant 5 : index
      %c0_36 = arith.constant 0 : index
      %c0_37 = arith.constant 0 : index
      %53 = vector.load %arg7[%52, %c5, %c0_36, %c0_37] : memref<2x6x16x256xf32, #tpu.memory_space<vmem>>, vector<1x1x16x256xf32>
      %54 = vector.shape_cast %53 : vector<1x1x16x256xf32> to vector<1x16x256xf32>
      %55 = vector.shape_cast %51 : vector<1x16x256xf32> to vector<1x1x16x256xf32>
      tpu.vector_store %arg7[%52, %c5, %c0_36, %c0_37], %55 {strides = array<i32>} : memref<2x6x16x256xf32, #tpu.memory_space<vmem>>, vector<1x1x16x256xf32>,
    } else {
    }
    %c0 = arith.constant 0 : index
    %c0_28 = arith.constant 0 : index
    %c0_29 = arith.constant 0 : index
    %47 = vector.load %arg4[%c0, %c0_28, %c0_29] : memref<3x3x256xf32, #tpu.memory_space<vmem>>, vector<3x3x256xf32>
    %c0_30 = arith.constant 0 : index
    %c0_31 = arith.constant 0 : index
    %48 = vector.load %arg5[%c0_30, %c0_31] : memref<1x256xf32, #tpu.memory_space<vmem>>, vector<1x256xf32>
    %49 = vector.shape_cast %48 : vector<1x256xf32> to vector<256xf32>
    %c0_i32_32 = arith.constant 0 : i32
    %c2_i32_33 = arith.constant 2 : i32
    %50 = arith.addi %c0_i32_32, %c2_i32_33 : i32
    %c1_i32_34 = arith.constant 1 : i32
    scf.for %arg9 = %c0_i32_32 to %50 step %c1_i32_34  : i32 {
      %c1_i32_36 = arith.constant 1 : i32
      %51 = arith.muli %arg9, %c1_i32_36 : i32
      %c0_i32_37 = arith.constant 0 : i32
      %52 = arith.addi %c0_i32_37, %51 : i32
      %c2_i32_38 = arith.constant 2 : i32
      %53 = arith.muli %52, %c2_i32_38 : i32
      %54 = tpu.assume_multiple %53, 2 : i32
      %cst = arith.constant 0.000000e+00 : f32
      %55 = vector.broadcast %cst : f32 to vector<2x14x256xf32>
      %c0_i32_39 = arith.constant 0 : i32
      %56 = arith.addi %54, %c0_i32_39 : i32
      %57 = arith.index_cast %9 : i32 to index
      %58 = arith.index_cast %56 : i32 to index
      %c0_40 = arith.constant 0 : index
      %c0_41 = arith.constant 0 : index
      %59 = vector.load %arg7[%57, %58, %c0_40, %c0_41] : memref<2x6x16x256xf32, #tpu.memory_space<vmem>>, vector<1x2x14x256xf32>
      %60 = vector.shape_cast %59 : vector<1x2x14x256xf32> to vector<2x14x256xf32>
      %61 = vector.extract_strided_slice %47 {offsets = [0, 0, 0], sizes = [1, 1, 256], strides = [1, 1, 1]} : vector<3x3x256xf32> to vector<1x1x256xf32>
      %62 = vector.shape_cast %61 : vector<1x1x256xf32> to vector<256xf32>
      %63 = vector.shape_cast %62 : vector<256xf32> to vector<1x1x256xf32>
      %64 = vector.broadcast %63 : vector<1x1x256xf32> to vector<2x14x256xf32>
      %65 = arith.mulf %60, %64 : vector<2x14x256xf32>
      %66 = arith.addf %55, %65 : vector<2x14x256xf32>
      %c0_i32_42 = arith.constant 0 : i32
      %67 = arith.addi %54, %c0_i32_42 : i32
      %68 = arith.index_cast %9 : i32 to index
      %69 = arith.index_cast %67 : i32 to index
      %c1 = arith.constant 1 : index
      %c0_43 = arith.constant 0 : index
      %70 = vector.load %arg7[%68, %69, %c1, %c0_43] : memref<2x6x16x256xf32, #tpu.memory_space<vmem>>, vector<1x2x14x256xf32>
      %71 = vector.shape_cast %70 : vector<1x2x14x256xf32> to vector<2x14x256xf32>
      %72 = vector.extract_strided_slice %47 {offsets = [0, 1, 0], sizes = [1, 1, 256], strides = [1, 1, 1]} : vector<3x3x256xf32> to vector<1x1x256xf32>
      %73 = vector.shape_cast %72 : vector<1x1x256xf32> to vector<256xf32>
      %74 = vector.shape_cast %73 : vector<256xf32> to vector<1x1x256xf32>
      %75 = vector.broadcast %74 : vector<1x1x256xf32> to vector<2x14x256xf32>
      %76 = arith.mulf %71, %75 : vector<2x14x256xf32>
      %77 = arith.addf %66, %76 : vector<2x14x256xf32>
      %c0_i32_44 = arith.constant 0 : i32
      %78 = arith.addi %54, %c0_i32_44 : i32
      %79 = arith.index_cast %9 : i32 to index
      %80 = arith.index_cast %78 : i32 to index
      %c2 = arith.constant 2 : index
      %c0_45 = arith.constant 0 : index
      %81 = vector.load %arg7[%79, %80, %c2, %c0_45] : memref<2x6x16x256xf32, #tpu.memory_space<vmem>>, vector<1x2x14x256xf32>
      %82 = vector.shape_cast %81 : vector<1x2x14x256xf32> to vector<2x14x256xf32>
      %83 = vector.extract_strided_slice %47 {offsets = [0, 2, 0], sizes = [1, 1, 256], strides = [1, 1, 1]} : vector<3x3x256xf32> to vector<1x1x256xf32>
      %84 = vector.shape_cast %83 : vector<1x1x256xf32> to vector<256xf32>
      %85 = vector.shape_cast %84 : vector<256xf32> to vector<1x1x256xf32>
      %86 = vector.broadcast %85 : vector<1x1x256xf32> to vector<2x14x256xf32>
      %87 = arith.mulf %82, %86 : vector<2x14x256xf32>
      %88 = arith.addf %77, %87 : vector<2x14x256xf32>
      %c1_i32_46 = arith.constant 1 : i32
      %89 = arith.addi %54, %c1_i32_46 : i32
      %90 = arith.index_cast %9 : i32 to index
      %91 = arith.index_cast %89 : i32 to index
      %c0_47 = arith.constant 0 : index
      %c0_48 = arith.constant 0 : index
      %92 = vector.load %arg7[%90, %91, %c0_47, %c0_48] : memref<2x6x16x256xf32, #tpu.memory_space<vmem>>, vector<1x2x14x256xf32>
      %93 = vector.shape_cast %92 : vector<1x2x14x256xf32> to vector<2x14x256xf32>
      %94 = vector.extract_strided_slice %47 {offsets = [1, 0, 0], sizes = [1, 1, 256], strides = [1, 1, 1]} : vector<3x3x256xf32> to vector<1x1x256xf32>
      %95 = vector.shape_cast %94 : vector<1x1x256xf32> to vector<256xf32>
      %96 = vector.shape_cast %95 : vector<256xf32> to vector<1x1x256xf32>
      %97 = vector.broadcast %96 : vector<1x1x256xf32> to vector<2x14x256xf32>
      %98 = arith.mulf %93, %97 : vector<2x14x256xf32>
      %99 = arith.addf %88, %98 : vector<2x14x256xf32>
      %c1_i32_49 = arith.constant 1 : i32
      %100 = arith.addi %54, %c1_i32_49 : i32
      %101 = arith.index_cast %9 : i32 to index
      %102 = arith.index_cast %100 : i32 to index
      %c1_50 = arith.constant 1 : index
      %c0_51 = arith.constant 0 : index
      %103 = vector.load %arg7[%101, %102, %c1_50, %c0_51] : memref<2x6x16x256xf32, #tpu.memory_space<vmem>>, vector<1x2x14x256xf32>
      %104 = vector.shape_cast %103 : vector<1x2x14x256xf32> to vector<2x14x256xf32>
      %105 = vector.extract_strided_slice %47 {offsets = [1, 1, 0], sizes = [1, 1, 256], strides = [1, 1, 1]} : vector<3x3x256xf32> to vector<1x1x256xf32>
      %106 = vector.shape_cast %105 : vector<1x1x256xf32> to vector<256xf32>
      %107 = vector.shape_cast %106 : vector<256xf32> to vector<1x1x256xf32>
      %108 = vector.broadcast %107 : vector<1x1x256xf32> to vector<2x14x256xf32>
      %109 = arith.mulf %104, %108 : vector<2x14x256xf32>
      %110 = arith.addf %99, %109 : vector<2x14x256xf32>
      %c1_i32_52 = arith.constant 1 : i32
      %111 = arith.addi %54, %c1_i32_52 : i32
      %112 = arith.index_cast %9 : i32 to index
      %113 = arith.index_cast %111 : i32 to index
      %c2_53 = arith.constant 2 : index
      %c0_54 = arith.constant 0 : index
      %114 = vector.load %arg7[%112, %113, %c2_53, %c0_54] : memref<2x6x16x256xf32, #tpu.memory_space<vmem>>, vector<1x2x14x256xf32>
      %115 = vector.shape_cast %114 : vector<1x2x14x256xf32> to vector<2x14x256xf32>
      %116 = vector.extract_strided_slice %47 {offsets = [1, 2, 0], sizes = [1, 1, 256], strides = [1, 1, 1]} : vector<3x3x256xf32> to vector<1x1x256xf32>
      %117 = vector.shape_cast %116 : vector<1x1x256xf32> to vector<256xf32>
      %118 = vector.shape_cast %117 : vector<256xf32> to vector<1x1x256xf32>
      %119 = vector.broadcast %118 : vector<1x1x256xf32> to vector<2x14x256xf32>
      %120 = arith.mulf %115, %119 : vector<2x14x256xf32>
      %121 = arith.addf %110, %120 : vector<2x14x256xf32>
      %c2_i32_55 = arith.constant 2 : i32
      %122 = arith.addi %54, %c2_i32_55 : i32
      %123 = arith.index_cast %9 : i32 to index
      %124 = arith.index_cast %122 : i32 to index
      %c0_56 = arith.constant 0 : index
      %c0_57 = arith.constant 0 : index
      %125 = vector.load %arg7[%123, %124, %c0_56, %c0_57] : memref<2x6x16x256xf32, #tpu.memory_space<vmem>>, vector<1x2x14x256xf32>
      %126 = vector.shape_cast %125 : vector<1x2x14x256xf32> to vector<2x14x256xf32>
      %127 = vector.extract_strided_slice %47 {offsets = [2, 0, 0], sizes = [1, 1, 256], strides = [1, 1, 1]} : vector<3x3x256xf32> to vector<1x1x256xf32>
      %128 = vector.shape_cast %127 : vector<1x1x256xf32> to vector<256xf32>
      %129 = vector.shape_cast %128 : vector<256xf32> to vector<1x1x256xf32>
      %130 = vector.broadcast %129 : vector<1x1x256xf32> to vector<2x14x256xf32>
      %131 = arith.mulf %126, %130 : vector<2x14x256xf32>
      %132 = arith.addf %121, %131 : vector<2x14x256xf32>
      %c2_i32_58 = arith.constant 2 : i32
      %133 = arith.addi %54, %c2_i32_58 : i32
      %134 = arith.index_cast %9 : i32 to index
      %135 = arith.index_cast %133 : i32 to index
      %c1_59 = arith.constant 1 : index
      %c0_60 = arith.constant 0 : index
      %136 = vector.load %arg7[%134, %135, %c1_59, %c0_60] : memref<2x6x16x256xf32, #tpu.memory_space<vmem>>, vector<1x2x14x256xf32>
      %137 = vector.shape_cast %136 : vector<1x2x14x256xf32> to vector<2x14x256xf32>
      %138 = vector.extract_strided_slice %47 {offsets = [2, 1, 0], sizes = [1, 1, 256], strides = [1, 1, 1]} : vector<3x3x256xf32> to vector<1x1x256xf32>
      %139 = vector.shape_cast %138 : vector<1x1x256xf32> to vector<256xf32>
      %140 = vector.shape_cast %139 : vector<256xf32> to vector<1x1x256xf32>
      %141 = vector.broadcast %140 : vector<1x1x256xf32> to vector<2x14x256xf32>
      %142 = arith.mulf %137, %141 : vector<2x14x256xf32>
      %143 = arith.addf %132, %142 : vector<2x14x256xf32>
      %c2_i32_61 = arith.constant 2 : i32
      %144 = arith.addi %54, %c2_i32_61 : i32
      %145 = arith.index_cast %9 : i32 to index
      %146 = arith.index_cast %144 : i32 to index
      %c2_62 = arith.constant 2 : index
      %c0_63 = arith.constant 0 : index
      %147 = vector.load %arg7[%145, %146, %c2_62, %c0_63] : memref<2x6x16x256xf32, #tpu.memory_space<vmem>>, vector<1x2x14x256xf32>
      %148 = vector.shape_cast %147 : vector<1x2x14x256xf32> to vector<2x14x256xf32>
      %149 = vector.extract_strided_slice %47 {offsets = [2, 2, 0], sizes = [1, 1, 256], strides = [1, 1, 1]} : vector<3x3x256xf32> to vector<1x1x256xf32>
      %150 = vector.shape_cast %149 : vector<1x1x256xf32> to vector<256xf32>
      %151 = vector.shape_cast %150 : vector<256xf32> to vector<1x1x256xf32>
      %152 = vector.broadcast %151 : vector<1x1x256xf32> to vector<2x14x256xf32>
      %153 = arith.mulf %148, %152 : vector<2x14x256xf32>
      %154 = arith.addf %143, %153 : vector<2x14x256xf32>
      %155 = vector.shape_cast %49 : vector<256xf32> to vector<1x1x256xf32>
      %156 = vector.broadcast %155 : vector<1x1x256xf32> to vector<2x14x256xf32>
      %157 = arith.addf %154, %156 : vector<2x14x256xf32>
      %c0_64 = arith.constant 0 : index
      %158 = arith.index_cast %54 : i32 to index
      %c1_65 = arith.constant 1 : index
      %c0_66 = arith.constant 0 : index
      %159 = vector.load %arg6[%c0_64, %158, %c1_65, %c0_66] : memref<1x4x16x256xf32, #tpu.memory_space<vmem>>, vector<1x2x14x256xf32>
      %160 = vector.shape_cast %159 : vector<1x2x14x256xf32> to vector<2x14x256xf32>
      %161 = vector.shape_cast %157 : vector<2x14x256xf32> to vector<1x2x14x256xf32>
      tpu.vector_store %arg6[%c0_64, %158, %c1_65, %c0_66], %161 {strides = array<i32>} : memref<1x4x16x256xf32, #tpu.memory_space<vmem>>, vector<1x2x14x256xf32>,
      %cst_67 = arith.constant 0.000000e+00 : f32
      %162 = vector.broadcast %cst_67 : f32 to vector<2x1x256xf32>
      %cst_68 = arith.constant 0.000000e+00 : f32
      %163 = vector.broadcast %cst_68 : f32 to vector<2x1x256xf32>
      %c0_i32_69 = arith.constant 0 : i32
      %164 = arith.addi %54, %c0_i32_69 : i32
      %165 = arith.index_cast %9 : i32 to index
      %166 = arith.index_cast %164 : i32 to index
      %c0_70 = arith.constant 0 : index
      %c0_71 = arith.constant 0 : index
      %167 = vector.load %arg7[%165, %166, %c0_70, %c0_71] : memref<2x6x16x256xf32, #tpu.memory_space<vmem>>, vector<1x2x1x256xf32>
      %168 = vector.shape_cast %167 : vector<1x2x1x256xf32> to vector<2x1x256xf32>
      %c0_i32_72 = arith.constant 0 : i32
      %169 = arith.addi %54, %c0_i32_72 : i32
      %170 = arith.index_cast %9 : i32 to index
      %171 = arith.index_cast %169 : i32 to index
      %c1_73 = arith.constant 1 : index
      %c0_74 = arith.constant 0 : index
      %172 = vector.load %arg7[%170, %171, %c1_73, %c0_74] : memref<2x6x16x256xf32, #tpu.memory_space<vmem>>, vector<1x2x1x256xf32>
      %173 = vector.shape_cast %172 : vector<1x2x1x256xf32> to vector<2x1x256xf32>
      %c0_i32_75 = arith.constant 0 : i32
      %174 = arith.addi %54, %c0_i32_75 : i32
      %175 = arith.index_cast %9 : i32 to index
      %176 = arith.index_cast %174 : i32 to index
      %c14 = arith.constant 14 : index
      %c0_76 = arith.constant 0 : index
      %177 = vector.load %arg7[%175, %176, %c14, %c0_76] : memref<2x6x16x256xf32, #tpu.memory_space<vmem>>, vector<1x2x1x256xf32>
      %178 = vector.shape_cast %177 : vector<1x2x1x256xf32> to vector<2x1x256xf32>
      %c0_i32_77 = arith.constant 0 : i32
      %179 = arith.addi %54, %c0_i32_77 : i32
      %180 = arith.index_cast %9 : i32 to index
      %181 = arith.index_cast %179 : i32 to index
      %c15 = arith.constant 15 : index
      %c0_78 = arith.constant 0 : index
      %182 = vector.load %arg7[%180, %181, %c15, %c0_78] : memref<2x6x16x256xf32, #tpu.memory_space<vmem>>, vector<1x2x1x256xf32>
      %183 = vector.shape_cast %182 : vector<1x2x1x256xf32> to vector<2x1x256xf32>
      %184 = vector.extract_strided_slice %47 {offsets = [0, 1, 0], sizes = [1, 1, 256], strides = [1, 1, 1]} : vector<3x3x256xf32> to vector<1x1x256xf32>
      %185 = vector.shape_cast %184 : vector<1x1x256xf32> to vector<256xf32>
      %186 = vector.shape_cast %185 : vector<256xf32> to vector<1x1x256xf32>
      %187 = vector.broadcast %186 : vector<1x1x256xf32> to vector<2x1x256xf32>
      %188 = arith.mulf %168, %187 : vector<2x1x256xf32>
      %189 = arith.addf %162, %188 : vector<2x1x256xf32>
      %190 = vector.extract_strided_slice %47 {offsets = [0, 2, 0], sizes = [1, 1, 256], strides = [1, 1, 1]} : vector<3x3x256xf32> to vector<1x1x256xf32>
      %191 = vector.shape_cast %190 : vector<1x1x256xf32> to vector<256xf32>
      %192 = vector.shape_cast %191 : vector<256xf32> to vector<1x1x256xf32>
      %193 = vector.broadcast %192 : vector<1x1x256xf32> to vector<2x1x256xf32>
      %194 = arith.mulf %173, %193 : vector<2x1x256xf32>
      %195 = arith.addf %189, %194 : vector<2x1x256xf32>
      %196 = vector.extract_strided_slice %47 {offsets = [0, 0, 0], sizes = [1, 1, 256], strides = [1, 1, 1]} : vector<3x3x256xf32> to vector<1x1x256xf32>
      %197 = vector.shape_cast %196 : vector<1x1x256xf32> to vector<256xf32>
      %198 = vector.shape_cast %197 : vector<256xf32> to vector<1x1x256xf32>
      %199 = vector.broadcast %198 : vector<1x1x256xf32> to vector<2x1x256xf32>
      %200 = arith.mulf %178, %199 : vector<2x1x256xf32>
      %201 = arith.addf %163, %200 : vector<2x1x256xf32>
      %202 = vector.extract_strided_slice %47 {offsets = [0, 1, 0], sizes = [1, 1, 256], strides = [1, 1, 1]} : vector<3x3x256xf32> to vector<1x1x256xf32>
      %203 = vector.shape_cast %202 : vector<1x1x256xf32> to vector<256xf32>
      %204 = vector.shape_cast %203 : vector<256xf32> to vector<1x1x256xf32>
      %205 = vector.broadcast %204 : vector<1x1x256xf32> to vector<2x1x256xf32>
      %206 = arith.mulf %183, %205 : vector<2x1x256xf32>
      %207 = arith.addf %201, %206 : vector<2x1x256xf32>
      %c1_i32_79 = arith.constant 1 : i32
      %208 = arith.addi %54, %c1_i32_79 : i32
      %209 = arith.index_cast %9 : i32 to index
      %210 = arith.index_cast %208 : i32 to index
      %c0_80 = arith.constant 0 : index
      %c0_81 = arith.constant 0 : index
      %211 = vector.load %arg7[%209, %210, %c0_80, %c0_81] : memref<2x6x16x256xf32, #tpu.memory_space<vmem>>, vector<1x2x1x256xf32>
      %212 = vector.shape_cast %211 : vector<1x2x1x256xf32> to vector<2x1x256xf32>
      %c1_i32_82 = arith.constant 1 : i32
      %213 = arith.addi %54, %c1_i32_82 : i32
      %214 = arith.index_cast %9 : i32 to index
      %215 = arith.index_cast %213 : i32 to index
      %c1_83 = arith.constant 1 : index
      %c0_84 = arith.constant 0 : index
      %216 = vector.load %arg7[%214, %215, %c1_83, %c0_84] : memref<2x6x16x256xf32, #tpu.memory_space<vmem>>, vector<1x2x1x256xf32>
      %217 = vector.shape_cast %216 : vector<1x2x1x256xf32> to vector<2x1x256xf32>
      %c1_i32_85 = arith.constant 1 : i32
      %218 = arith.addi %54, %c1_i32_85 : i32
      %219 = arith.index_cast %9 : i32 to index
      %220 = arith.index_cast %218 : i32 to index
      %c14_86 = arith.constant 14 : index
      %c0_87 = arith.constant 0 : index
      %221 = vector.load %arg7[%219, %220, %c14_86, %c0_87] : memref<2x6x16x256xf32, #tpu.memory_space<vmem>>, vector<1x2x1x256xf32>
      %222 = vector.shape_cast %221 : vector<1x2x1x256xf32> to vector<2x1x256xf32>
      %c1_i32_88 = arith.constant 1 : i32
      %223 = arith.addi %54, %c1_i32_88 : i32
      %224 = arith.index_cast %9 : i32 to index
      %225 = arith.index_cast %223 : i32 to index
      %c15_89 = arith.constant 15 : index
      %c0_90 = arith.constant 0 : index
      %226 = vector.load %arg7[%224, %225, %c15_89, %c0_90] : memref<2x6x16x256xf32, #tpu.memory_space<vmem>>, vector<1x2x1x256xf32>
      %227 = vector.shape_cast %226 : vector<1x2x1x256xf32> to vector<2x1x256xf32>
      %228 = vector.extract_strided_slice %47 {offsets = [1, 1, 0], sizes = [1, 1, 256], strides = [1, 1, 1]} : vector<3x3x256xf32> to vector<1x1x256xf32>
      %229 = vector.shape_cast %228 : vector<1x1x256xf32> to vector<256xf32>
      %230 = vector.shape_cast %229 : vector<256xf32> to vector<1x1x256xf32>
      %231 = vector.broadcast %230 : vector<1x1x256xf32> to vector<2x1x256xf32>
      %232 = arith.mulf %212, %231 : vector<2x1x256xf32>
      %233 = arith.addf %195, %232 : vector<2x1x256xf32>
      %234 = vector.extract_strided_slice %47 {offsets = [1, 2, 0], sizes = [1, 1, 256], strides = [1, 1, 1]} : vector<3x3x256xf32> to vector<1x1x256xf32>
      %235 = vector.shape_cast %234 : vector<1x1x256xf32> to vector<256xf32>
      %236 = vector.shape_cast %235 : vector<256xf32> to vector<1x1x256xf32>
      %237 = vector.broadcast %236 : vector<1x1x256xf32> to vector<2x1x256xf32>
      %238 = arith.mulf %217, %237 : vector<2x1x256xf32>
      %239 = arith.addf %233, %238 : vector<2x1x256xf32>
      %240 = vector.extract_strided_slice %47 {offsets = [1, 0, 0], sizes = [1, 1, 256], strides = [1, 1, 1]} : vector<3x3x256xf32> to vector<1x1x256xf32>
      %241 = vector.shape_cast %240 : vector<1x1x256xf32> to vector<256xf32>
      %242 = vector.shape_cast %241 : vector<256xf32> to vector<1x1x256xf32>
      %243 = vector.broadcast %242 : vector<1x1x256xf32> to vector<2x1x256xf32>
      %244 = arith.mulf %222, %243 : vector<2x1x256xf32>
      %245 = arith.addf %207, %244 : vector<2x1x256xf32>
      %246 = vector.extract_strided_slice %47 {offsets = [1, 1, 0], sizes = [1, 1, 256], strides = [1, 1, 1]} : vector<3x3x256xf32> to vector<1x1x256xf32>
      %247 = vector.shape_cast %246 : vector<1x1x256xf32> to vector<256xf32>
      %248 = vector.shape_cast %247 : vector<256xf32> to vector<1x1x256xf32>
      %249 = vector.broadcast %248 : vector<1x1x256xf32> to vector<2x1x256xf32>
      %250 = arith.mulf %227, %249 : vector<2x1x256xf32>
      %251 = arith.addf %245, %250 : vector<2x1x256xf32>
      %c2_i32_91 = arith.constant 2 : i32
      %252 = arith.addi %54, %c2_i32_91 : i32
      %253 = arith.index_cast %9 : i32 to index
      %254 = arith.index_cast %252 : i32 to index
      %c0_92 = arith.constant 0 : index
      %c0_93 = arith.constant 0 : index
      %255 = vector.load %arg7[%253, %254, %c0_92, %c0_93] : memref<2x6x16x256xf32, #tpu.memory_space<vmem>>, vector<1x2x1x256xf32>
      %256 = vector.shape_cast %255 : vector<1x2x1x256xf32> to vector<2x1x256xf32>
      %c2_i32_94 = arith.constant 2 : i32
      %257 = arith.addi %54, %c2_i32_94 : i32
      %258 = arith.index_cast %9 : i32 to index
      %259 = arith.index_cast %257 : i32 to index
      %c1_95 = arith.constant 1 : index
      %c0_96 = arith.constant 0 : index
      %260 = vector.load %arg7[%258, %259, %c1_95, %c0_96] : memref<2x6x16x256xf32, #tpu.memory_space<vmem>>, vector<1x2x1x256xf32>
      %261 = vector.shape_cast %260 : vector<1x2x1x256xf32> to vector<2x1x256xf32>
      %c2_i32_97 = arith.constant 2 : i32
      %262 = arith.addi %54, %c2_i32_97 : i32
      %263 = arith.index_cast %9 : i32 to index
      %264 = arith.index_cast %262 : i32 to index
      %c14_98 = arith.constant 14 : index
      %c0_99 = arith.constant 0 : index
      %265 = vector.load %arg7[%263, %264, %c14_98, %c0_99] : memref<2x6x16x256xf32, #tpu.memory_space<vmem>>, vector<1x2x1x256xf32>
      %266 = vector.shape_cast %265 : vector<1x2x1x256xf32> to vector<2x1x256xf32>
      %c2_i32_100 = arith.constant 2 : i32
      %267 = arith.addi %54, %c2_i32_100 : i32
      %268 = arith.index_cast %9 : i32 to index
      %269 = arith.index_cast %267 : i32 to index
      %c15_101 = arith.constant 15 : index
      %c0_102 = arith.constant 0 : index
      %270 = vector.load %arg7[%268, %269, %c15_101, %c0_102] : memref<2x6x16x256xf32, #tpu.memory_space<vmem>>, vector<1x2x1x256xf32>
      %271 = vector.shape_cast %270 : vector<1x2x1x256xf32> to vector<2x1x256xf32>
      %272 = vector.extract_strided_slice %47 {offsets = [2, 1, 0], sizes = [1, 1, 256], strides = [1, 1, 1]} : vector<3x3x256xf32> to vector<1x1x256xf32>
      %273 = vector.shape_cast %272 : vector<1x1x256xf32> to vector<256xf32>
      %274 = vector.shape_cast %273 : vector<256xf32> to vector<1x1x256xf32>
      %275 = vector.broadcast %274 : vector<1x1x256xf32> to vector<2x1x256xf32>
      %276 = arith.mulf %256, %275 : vector<2x1x256xf32>
      %277 = arith.addf %239, %276 : vector<2x1x256xf32>
      %278 = vector.extract_strided_slice %47 {offsets = [2, 2, 0], sizes = [1, 1, 256], strides = [1, 1, 1]} : vector<3x3x256xf32> to vector<1x1x256xf32>
      %279 = vector.shape_cast %278 : vector<1x1x256xf32> to vector<256xf32>
      %280 = vector.shape_cast %279 : vector<256xf32> to vector<1x1x256xf32>
      %281 = vector.broadcast %280 : vector<1x1x256xf32> to vector<2x1x256xf32>
      %282 = arith.mulf %261, %281 : vector<2x1x256xf32>
      %283 = arith.addf %277, %282 : vector<2x1x256xf32>
      %284 = vector.extract_strided_slice %47 {offsets = [2, 0, 0], sizes = [1, 1, 256], strides = [1, 1, 1]} : vector<3x3x256xf32> to vector<1x1x256xf32>
      %285 = vector.shape_cast %284 : vector<1x1x256xf32> to vector<256xf32>
      %286 = vector.shape_cast %285 : vector<256xf32> to vector<1x1x256xf32>
      %287 = vector.broadcast %286 : vector<1x1x256xf32> to vector<2x1x256xf32>
      %288 = arith.mulf %266, %287 : vector<2x1x256xf32>
      %289 = arith.addf %251, %288 : vector<2x1x256xf32>
      %290 = vector.extract_strided_slice %47 {offsets = [2, 1, 0], sizes = [1, 1, 256], strides = [1, 1, 1]} : vector<3x3x256xf32> to vector<1x1x256xf32>
      %291 = vector.shape_cast %290 : vector<1x1x256xf32> to vector<256xf32>
      %292 = vector.shape_cast %291 : vector<256xf32> to vector<1x1x256xf32>
      %293 = vector.broadcast %292 : vector<1x1x256xf32> to vector<2x1x256xf32>
      %294 = arith.mulf %271, %293 : vector<2x1x256xf32>
      %295 = arith.addf %289, %294 : vector<2x1x256xf32>
      %296 = vector.shape_cast %49 : vector<256xf32> to vector<1x1x256xf32>
      %297 = vector.broadcast %296 : vector<1x1x256xf32> to vector<2x1x256xf32>
      %298 = arith.addf %283, %297 : vector<2x1x256xf32>
      %c0_103 = arith.constant 0 : index
      %299 = arith.index_cast %54 : i32 to index
      %c0_104 = arith.constant 0 : index
      %c0_105 = arith.constant 0 : index
      %300 = vector.load %arg6[%c0_103, %299, %c0_104, %c0_105] : memref<1x4x16x256xf32, #tpu.memory_space<vmem>>, vector<1x2x1x256xf32>
      %301 = vector.shape_cast %300 : vector<1x2x1x256xf32> to vector<2x1x256xf32>
      %302 = vector.shape_cast %298 : vector<2x1x256xf32> to vector<1x2x1x256xf32>
      tpu.vector_store %arg6[%c0_103, %299, %c0_104, %c0_105], %302 {strides = array<i32>} : memref<1x4x16x256xf32, #tpu.memory_space<vmem>>, vector<1x2x1x256xf32>,
      %303 = vector.shape_cast %49 : vector<256xf32> to vector<1x1x256xf32>
      %304 = vector.broadcast %303 : vector<1x1x256xf32> to vector<2x1x256xf32>
      %305 = arith.addf %295, %304 : vector<2x1x256xf32>
      %c0_106 = arith.constant 0 : index
      %306 = arith.index_cast %54 : i32 to index
      %c15_107 = arith.constant 15 : index
      %c0_108 = arith.constant 0 : index
      %307 = vector.load %arg6[%c0_106, %306, %c15_107, %c0_108] : memref<1x4x16x256xf32, #tpu.memory_space<vmem>>, vector<1x2x1x256xf32>
      %308 = vector.shape_cast %307 : vector<1x2x1x256xf32> to vector<2x1x256xf32>
      %309 = vector.shape_cast %305 : vector<2x1x256xf32> to vector<1x2x1x256xf32>
      tpu.vector_store %arg6[%c0_106, %306, %c15_107, %c0_108], %309 {strides = array<i32>} : memref<1x4x16x256xf32, #tpu.memory_space<vmem>>, vector<1x2x1x256xf32>,
    }
    %c2_i32_35 = arith.constant 2 : i32
    return
  }
  func.func @transform_1(%arg0: i32, %arg1: i32, %arg2: i32) -> (i32, i32, i32) {
    %c0_i32 = arith.constant 0 : i32
    %c0_i32_0 = arith.constant 0 : i32
    %c0_i32_1 = arith.constant 0 : i32
    return %c0_i32, %c0_i32_0, %arg0 : i32, i32, i32
  }
  func.func @transform_2(%arg0: i32, %arg1: i32, %arg2: i32) -> (i32, i32) {
    %c0_i32 = arith.constant 0 : i32
    %c0_i32_0 = arith.constant 0 : i32
    return %c0_i32, %arg0 : i32, i32
  }
  func.func @transform_3(%arg0: i32, %arg1: i32, %arg2: i32) -> (i32, i32, i32, i32) {
    %c0_i32 = arith.constant 0 : i32
    %c0_i32_0 = arith.constant 0 : i32
    return %arg1, %arg2, %c0_i32, %arg0 : i32, i32, i32, i32
  }
}

</mosaic_0001>

<bundles_post_ra>
// kernel: dwconv_forward.1
= control target key start
LH: loop header
LB: loop body
LE: loop exit
PB: predicated region body
PF: predicated region fallthrough
CT: control target
= control target key end

     0   :  { %s3108_s0 = inlined_call_operand.hbm [shape: f32[2,16,16,256], index: 0, kind: input, shape index: {}]   ;;  %s3109_s1 = inlined_call_operand.hbm [shape: f32[3,3,256], index: 1, kind: input, shape index: {}]   ;;  %s3110_s2 = inlined_call_operand.vmem [shape: f32[1,256], index: 2, kind: input, shape index: {}]   ;;  %s3111_s3 = inlined_call_operand.hbm [shape: f32[2,16,16,256], index: 3, kind: output, shape index: {}]  }
   0x1   :  { %3151 = sst [smem:[#allocation46_spill]] %s3109_s1 }
   0x2   :  { %3152 = sst [smem:[#allocation47_spill]] %s3110_s2 }
   0x3   :  { %3153 = sst [smem:[#allocation48_spill]] %s3111_s3 }
   0x4   :  { %8 = vsyncpa [#allocation5], 0 }
   0x5   :  { %9 = vsyncpa [#allocation6], 0 }
   0x6   :  { %11 = vsyncpa [#allocation6 + $0x1], 0  ;;  %s2079_s12 = smov 0   ;;  %s2081_s13 = smov 0  }
   0x7   :  { %s2083_s14 = smov 0   ;;  %s2085_s15 = smov 0  }
   0x8   :  { %s2087_s16 = smov 0   ;;  %s2089_s17 = smov 0  }
   0x9   :  { %s2091_s18 = smov 0   ;;  %s2093_s19 = smov 0  }
   0xa LB: > { %3154 = sst [smem:[#allocation27_spill]] %s2015_s12  ;;  %s1493_s20 = sadd.s32 4294967295, %s2043_s19   ;;  %s2043_s19 = sphi %s2093_s19, %s17_s19   ;;  %s2039_s18 = sphi %s2091_s18, %s3233_s18   ;;  %s2035_s17 = sphi %s2089_s17, %s3232_s17   ;;  %s2031_s16 = sphi %s2087_s16, %s3231_s16   ;;  %s2027_s15 = sphi %s2085_s15, %s3230_s15   ;;  %s2023_s14 = sphi %s2083_s14, %s3229_s14   ;;  %s2019_s13 = sphi %s2081_s13, %s3228_s13   ;;  %s2015_s12 = sphi %s2079_s12, %s3227_s12  }
   0xb   : > { %3155 = sst [smem:[#allocation28_spill]] %s2019_s13  ;;  %s1494_s21 = sadd.s32 4294967294, %s2043_s19  }
   0xc   : > { %3156 = sst [smem:[#allocation29_spill]] %s2023_s14  ;;  %s29_s22 = sadd.s32 1, %s2035_s17 }
   0xd   : > { %3157 = sst [smem:[#allocation30_spill]] %s2035_s17  ;;  %s32_s23 = sadd.s32 1, %s2039_s18 }
   0xe   : > { %3158 = sst [smem:[#allocation31_spill]] %s2039_s18  ;;  %p30_p0 = scmp.ge.s32.totalorder %s29_s22, 4 }
   0xf   : > { %3159 = sst [smem:[#allocation32_spill]] %s2043_s19  ;;  %s99_s24 = sadd.s32 1, %s2023_s14 }
  0x10   : > { %p109_p1 = scmp.ne.s32.totalorder %s2023_s14, %s2019_s13  ;;  %p110_p2 = scmp.eq.s32.totalorder %s1493_s20, 7 }
  0x11   : > { %s3235_s22 = smov (%p30_p0, %s29_s22), 0  ;;  %s3237_s23 = smov (!%p30_p0, %s32_s23), %s2039_s18 }
  0x12   : > { %3160 = sst [smem:[#allocation33_spill]] %s3235_s22  ;;  %s93_s25 = ssub.s32 %s2035_s17, %s3235_s22 }
  0x13   : > { %p2131_p3 = por %p110_p2, %p109_p1  ;;  %p34_p4 = scmp.ge.s32.totalorder %s3237_s23, 2 }
  0x14   : > { %p115_p5 = scmp.ne.s32.totalorder %s2019_s13, %s2015_s12  ;;  %p116_p6 = scmp.eq.s32.totalorder %s1494_s21, 7 }
  0x15   : > { %s3161_s26 = scalar_select %p2131_p3, 1, 0 }
  0x16   : > { %p1495_p7 = scmp.ge.s32.totalorder %s2043_s19, 1  ;;  %s3239_s23 = smov (%p34_p4, %s3237_s23), 0 }
  0x17   : > { %3162 = sst [smem:[#allocation34_spill]] %s3161_s26  ;;  %p2140_p8 = por %p116_p6, %p115_p5 }
  0x18   : > { %3163 = sst [smem:[#allocation35_spill]] %s3239_s23  ;;  %p123_p9 = scmp.lt.s32.totalorder %s2043_s19, 9 }
  0x19   : > { %s3164_s27 = scalar_select %p2140_p8, 1, 0 }
  0x1a   : > { %s92_s28 = ssub.s32 %s2039_s18, %s3239_s23  ;;  %p2147_p10 = pnand %p1495_p7, %p123_p9 }
  0x1b   : > { %3165 = sst [smem:[#allocation36_spill]] %s3164_s27  ;;  %s94_s29 = sor.u32 %s93_s25, %s92_s28 }
  0x1c   : > { %p97_p11 = scmp.eq.s32.totalorder %s94_s29, 0  ;;  %p2151_p12 = scmp.eq.s32.totalorder %s1493_s20, 0 }
  0x1d   : > { %p1661_p13 = pneg %p2147_p10  ;;  %s2049_s6 = smov [#allocation4]  }
  0x1e   : > { %s2158_s5 = scalar_select %p97_p11, %s2023_s14, %s99_s24  }
  0x1f   : > { %s138_s7 = sshll.u32 %s2049_s6, 4  ;;  %p2162_p0 = pnand %p2151_p12, %p1661_p13  ;;  %s139_s7 = int_to_ptr.vmem [resolvable:$true] %s138_s7 }
  0x20   : > { %3168 = sst [smem:[#allocation37_spill]] %s2158_s5  ;;  %s1765_s9 = scalar_lea.vmem %s139_s7, 384 }
  0x21   : > { %p1756_p1 = pneg %p2162_p0  ;;  %p1766_p2 = scmp.ne.s32.totalorder %s139_s7, %s1765_s9 }
  0x22   : > { %p1773_p6 = scmp.lt.s32.totalorder %s139_s7, %s139_s7  ;;  %p1774_p7 = scmp.lt.s32.totalorder %s1765_s9, %s1765_s9 }
  0x23   : > { %p1768_p4 = pnand %p1766_p2, %p1756_p1 }
  0x24   : > { %p1775_p9 = por %p1774_p7, %p1773_p6 }
  0x25   : > { %p1769_p5 = pneg %p1768_p4 }
  0x27   : > { %p1776_p11 = pnand %p1775_p9, %p1769_p5 }
  0x29   : > { %1779 = shalt.err (!%p1776_p11)
}
  0x2a   : > { %s2050_s10 = smov 128   ;;  %s2051_s11 = smov 8  }
  0x2b   : > { %s3170_s1 = sld [smem:[#allocation46_spill]] }
  0x2d   : > { %162 = sbr.rel (%p2147_p10) target bundleno = 367 (0x16f), region = 28 }
  0x31   : > { %1664 = dma.hbm_to_vmem [thread:$0]  (!%p2162_p0), %s3170_s1, 384, %s139_s7, [#allocation5], %s2050_s10, %s2050_s10, %s2051_s11  }
  0x32   : > { %2000 = dma.done.wait (%p2151_p12), [#allocation5], 384  }
  0x33   : > { %2002 = vsyncadd (%p2151_p12), [#allocation5], 4294966912  ;;  %s3112_s24 = sand.u32 1, %s2019_s13   ;;  %p191_p13 = scmp.lt.s32.totalorder %s2027_s15, 0 }
  0x34   : > { %s2183_s25 = sshll.u32 %s3112_s24, 7  ;;  %s192_s28 = ssub.s32 0, %s2027_s15 }
  0x35   : > { %s1501_s29 = smin.u32 %s2027_s15, %s192_s28  ;;  %p1671_p12 = scmp.eq.s32.totalorder %s2027_s15, 0 }
  0x36   : > { %s194_s30 = sand.u32 1, %s1501_s29   ;;  %s1636_s6 = sshll.u32 %s2027_s15, 4 }
  0x37   : > { %s195_s4 = ssub.s32 0, %s194_s30  ;;  %s2191_s7 = sshll.u32 %s2031_s16, 6 }
  0x38   : > { %s3241_s4 = smov (!%p191_p13, %s195_s4), %s194_s30  ;;  %s2194_s9 = sadd.s32 %s1636_s6, %s2191_s7 }
  0x39   : > { %p1503_p0 = scmp.lt.s32.totalorder %s3241_s4, 0  ;;  %s201_s8 = sadd.s32 2, %s3241_s4 }
  0x3a   : > { %3171 = sst [smem:[#allocation38_spill]] %s2194_s9  ;;  %s1505_s10 = sshll.u32 %s2027_s15, 2 }
  0x3b   : > { %s3243_s8 = smov (!%p1503_p0, %s201_s8), %s3241_s4  ;;  %s3113_s11 = sshll.u32 %s2194_s9, 7 }
  0x3c   : > { %s2200_s20 = sadd.s32 4294967295, %s1505_s10  ;;  %s2207_s28 = scalar_lea.hbm %s3108_s0, %s3113_s11 }
  0x3d   : > { %s1510_s29 = smul.u32 192, %s3243_s8  ;;  %s2211_s30 = scalar_lea.hbm %s2207_s28, 2048 }
  0x3e   : > { %s2214_s4 = scalar_lea.sflag [#allocation3], %s3243_s8  ;;  %p210_p1 = scmp.gt.s32.totalorder %s2200_s20, 0 }
  0x3f   : > { %s2217_s6 = scalar_lea.sflag %s2214_s4, 2 [#allocation3]  ;;  %s2219_s24 = scalar_lea.vmem [#allocation2], %s1510_s29 }
  0x40   : > { %s1324_s21 = scalar_lea.vmem %s2219_s24, 32 [#allocation2]  ;;  %s2223_s16 = scalar_lea.sflag %s2214_s4, 4 [#allocation3] }
  0x41   : > { %s235_s11 = sshll.u32 %s1324_s21, 4  ;;  %s2226_s1 = sadd.s32 4, %s1505_s10  ;;  %s236_s11 = int_to_ptr.vmem [resolvable:$true] %s235_s11 }
  0x42   : > { %p1781_p2 = scmp.ne.s32.totalorder %s2207_s28, %s2211_s30  ;;  %s2235_s18 = scalar_lea.hbm %s3108_s0, 16384 }
  0x43   : > { %p1785_p6 = scmp.lt.s32.totalorder %s2207_s28, %s3108_s0  ;;  %p1786_p7 = scmp.lt.s32.totalorder %s2235_s18, %s2211_s30 }
  0x44   : > { %p1782_p4 = pnand %p1781_p2, %p1671_p12 }
  0x45   : > { %p1787_p9 = por %p1786_p7, %p1785_p6 }
  0x46   : > { %p1783_p5 = pneg %p1782_p4 }
  0x48   : > { %p1788_p11 = pnand %p1787_p9, %p1783_p5 }
  0x4a   : > { %1791 = shalt.err (!%p1788_p11)  }
  0x4b   : > { %s1792_s10 = scalar_lea.vmem %s236_s11, 2048  ;;  %s2052_s21 = smov [#allocation2]  }
  0x4c   : > { %p1793_p13 = scmp.ne.s32.totalorder %s236_s11, %s1792_s10  ;;  %s1796_s5 = sshll.u32 %s2052_s21, 4  ;;  %s2245_s5 = int_to_ptr.vmem [resolvable:$false] %s1796_s5 }
  0x4d   : > { %s2248_s22 = scalar_lea.vmem %s2245_s5, 6144  ;;  %p1799_p4 = scmp.lt.s32.totalorder %s236_s11, %s2245_s5 }
  0x4e   : > { %p1794_p0 = pnand %p1793_p13, %p1671_p12  ;;  %p1800_p10 = scmp.lt.s32.totalorder %s2248_s22, %s1792_s10 }
  0x50   : > { %p1795_p2 = pneg %p1794_p0  ;;  %p1801_p6 = por %p1800_p10, %p1799_p4 }
  0x52   : > { %p1802_p5 = pnand %p1801_p6, %p1795_p2 }
  0x54   : > { %1805 = shalt.err (!%p1802_p5)  }
  0x55   : > { %1652 = dma.hbm_to_vmem [thread:$0]  (%p1671_p12), %s2207_s28, 2048, %s236_s11, %s2214_s4 }
  0x56   : > { %s3245_s20 = smov (!%p210_p1, %s2200_s20), 0  ;;  %s255_s17 = sshll.u32 %s2219_s24, 4  ;;  %s256_s17 = int_to_ptr.vmem [resolvable:$true] %s255_s17 }
  0x57   : > { %s1511_s23 = sshll.u32 %s3245_s20, 2  ;;  %s1345_s10 = scalar_lea.vmem %s2219_s24, 160 [#allocation2] }
  0x58   : > { %s241_s29 = sadd.s32 %s1511_s23, %s2191_s7  ;;  %s276_s14 = sshll.u32 %s1345_s10, 4  ;;  %s2266_s14 = int_to_ptr.vmem [resolvable:$true] %s276_s14 }
  0x59   : > { %s1512_s21 = sshll.u32 %s241_s29, 7 }
  0x5a   : > { %s243_s19 = scalar_lea.hbm %s3108_s0, %s1512_s21 }
  0x5b   : > { %s1806_s26 = scalar_lea.hbm %s243_s19, 512  ;;  %p1811_p11 = scmp.lt.s32.totalorder %s243_s19, %s3108_s0 }
  0x5c   : > { %p1807_p10 = scmp.ne.s32.totalorder %s243_s19, %s1806_s26  ;;  %p1812_p13 = scmp.lt.s32.totalorder %s2235_s18, %s1806_s26 }
  0x5e   : > { %p1808_p9 = pnand %p1807_p10, %p1671_p12  ;;  %p1813_p0 = por %p1812_p13, %p1811_p11 }
  0x60   : > { %p1809_p1 = pneg %p1808_p9 }
  0x62   : > { %p1814_p2 = pnand %p1813_p0, %p1809_p1 }
  0x64   : > { %1817 = shalt.err (!%p1814_p2)  }
  0x65   : > { %s1818_s20 = scalar_lea.vmem %s256_s17, 512  ;;  %p1825_p7 = scmp.lt.s32.totalorder %s256_s17, %s2245_s5 }
  0x66   : > { %p1819_p4 = scmp.ne.s32.totalorder %s256_s17, %s1818_s20  ;;  %p1826_p8 = scmp.lt.s32.totalorder %s2248_s22, %s1818_s20 }
  0x68   : > { %p1820_p6 = pnand %p1819_p4, %p1671_p12  ;;  %p1827_p10 = por %p1826_p8, %p1825_p7 }
  0x6a   : > { %p1821_p5 = pneg %p1820_p6 }
  0x6c   : > { %p1828_p9 = pnand %p1827_p10, %p1821_p5 }
  0x6e   : > { %1831 = shalt.err (!%p1828_p9)  }
  0x6f   : > { %1653 = dma.hbm_to_vmem [thread:$0]  (%p1671_p12), %s243_s19, 512, %s256_s17, %s2217_s6 }
  0x70   : > { %p3172_p1 = scmp.lt.s32.totalorder %s2226_s1, 15  ;;  %s280_s13 = sadd.s32 1, %s2027_s15 }
  0x71   : > { %s285_s26 = ssub.s32 1, %s3243_s8  ;;  %p2287_p8 = scmp.lt.s32.totalorder %s280_s13, 4 }
  0x72   : > { %s214_s12 = scalar_select %p3172_p1, %s2226_s1, 15 }
  0x73   : > { %s1524_s21 = smul.u32 192, %s285_s26 }
  0x74   : > { %s1514_s27 = sshll.u32 %s214_s12, 2 }
  0x75   : > { %s261_s23 = sadd.s32 %s1514_s27, %s2191_s7 }
  0x76   : > { %s1515_s10 = sshll.u32 %s261_s23, 7 }
  0x77   : > { %s263_s3 = scalar_lea.hbm %s3108_s0, %s1515_s10 }
  0x78   : > { %s1832_s9 = scalar_lea.hbm %s263_s3, 512  ;;  %p1837_p0 = scmp.lt.s32.totalorder %s263_s3, %s3108_s0 }
  0x79   : > { %p1833_p7 = scmp.ne.s32.totalorder %s263_s3, %s1832_s9  ;;  %p1838_p2 = scmp.lt.s32.totalorder %s2235_s18, %s1832_s9 }
  0x7b   : > { %p1834_p11 = pnand %p1833_p7, %p1671_p12  ;;  %p1839_p4 = por %p1838_p2, %p1837_p0 }
  0x7d   : > { %p1835_p13 = pneg %p1834_p11 }
  0x7f   : > { %p1840_p6 = pnand %p1839_p4, %p1835_p13 }
  0x81   : > { %1843 = shalt.err (!%p1840_p6)  }
  0x82   : > { %s1844_s12 = scalar_lea.vmem %s2266_s14, 512  ;;  %p1851_p1 = scmp.lt.s32.totalorder %s2266_s14, %s2245_s5 }
  0x83   : > { %p1845_p5 = scmp.ne.s32.totalorder %s2266_s14, %s1844_s12  ;;  %p1852_p7 = scmp.lt.s32.totalorder %s2248_s22, %s1844_s12 }
  0x85   : > { %p1846_p10 = pnand %p1845_p5, %p1671_p12  ;;  %p1853_p11 = por %p1852_p7, %p1851_p1 }
  0x87   : > { %p1847_p9 = pneg %p1846_p10 }
  0x89   : > { %p1854_p3 = pnand %p1853_p11, %p1847_p9 }
  0x8b   : > { %1857 = shalt.err (!%p1854_p3)  }
  0x8c   : > { %1654 = dma.hbm_to_vmem [thread:$0]  (%p1671_p12), %s263_s3, 512, %s2266_s14, %s2223_s16 }
  0x8d   : > { %s1519_s9 = sadd.s32 4294967295, %s2226_s1  ;;  %s2314_s13 = scalar_lea.vmem [#allocation2], %s1524_s21 }
  0x8e   : > { %s1358_s27 = scalar_lea.vmem %s2314_s13, 32 [#allocation2]  ;;  %p2319_p3 = scmp.gt.s32.totalorder %s1519_s9, 0 }
  0x8f   : > { %s313_s10 = sshll.u32 %s1358_s27, 4  ;;  %s2325_s11 = scalar_lea.sflag [#allocation3], %s285_s26  ;;  %s314_s10 = int_to_ptr.vmem [resolvable:$true] %s313_s10 }
  0x90   : > { %s333_s19 = sshll.u32 %s2314_s13, 4  ;;  %s1884_s3 = scalar_lea.hbm %s2207_s28, 4096  ;;  %s334_s19 = int_to_ptr.vmem [resolvable:$true] %s333_s19 }
  0x91   : > { %p1859_p12 = scmp.ne.s32.totalorder %s2211_s30, %s1884_s3  ;;  %p1863_p2 = scmp.lt.s32.totalorder %s2211_s30, %s3108_s0 }
  0x92   : > { %p1864_p4 = scmp.lt.s32.totalorder %s2235_s18, %s1884_s3 }
  0x93   : > { %p1860_p13 = pnand %p1859_p12, %p2287_p8 }
  0x94   : > { %p1865_p6 = por %p1864_p4, %p1863_p2 }
  0x95   : > { %p1861_p0 = pneg %p1860_p13 }
  0x97   : > { %p1866_p5 = pnand %p1865_p6, %p1861_p0 }
  0x99   : > { %1869 = shalt.err (!%p1866_p5)  }
  0x9a   : > { %s1870_s17 = scalar_lea.vmem %s314_s10, 2048  ;;  %p1877_p7 = scmp.lt.s32.totalorder %s314_s10, %s2245_s5 }
  0x9b   : > { %p1871_p10 = scmp.ne.s32.totalorder %s314_s10, %s1870_s17  ;;  %p1878_p11 = scmp.lt.s32.totalorder %s2248_s22, %s1870_s17 }
  0x9d   : > { %p1872_p9 = pnand %p1871_p10, %p2287_p8  ;;  %p1879_p12 = por %p1878_p11, %p1877_p7 }
  0x9f   : > { %p1873_p1 = pneg %p1872_p9 }
  0xa1   : > { %p1880_p13 = pnand %p1879_p12, %p1873_p1 }
  0xa3   : > { %1883 = shalt.err (!%p1880_p13)  }
  0xa4   : > { %1656 = dma.hbm_to_vmem [thread:$0]  (%p2287_p8), %s2211_s30, 2048, %s314_s10, %s2325_s11 }
  0xa5   : > { %s3247_s9 = smov (!%p2319_p3, %s1519_s9), 0  ;;  %s290_s28 = sadd.s32 4, %s2226_s1 }
  0xa6   : > { %s1525_s26 = sshll.u32 %s3247_s9, 2  ;;  %p2351_p0 = scmp.lt.s32.totalorder %s290_s28, 15 }
  0xa7   : > { %s319_s27 = sadd.s32 %s1525_s26, %s2191_s7  ;;  %s1379_s3 = scalar_lea.vmem %s2314_s13, 160 [#allocation2] }
  0xa8   : > { %s1526_s14 = sshll.u32 %s319_s27, 7  ;;  %s354_s2 = sshll.u32 %s1379_s3, 4  ;;  %s355_s2 = int_to_ptr.vmem [resolvable:$true] %s354_s2 }
  0xa9   : > { %s321_s20 = scalar_lea.hbm %s3108_s0, %s1526_s14 }
  0xaa   : > { %s1885_s30 = scalar_lea.hbm %s321_s20, 512  ;;  %p1890_p6 = scmp.lt.s32.totalorder %s321_s20, %s3108_s0 }
  0xab   : > { %p1886_p2 = scmp.ne.s32.totalorder %s321_s20, %s1885_s30  ;;  %p1891_p5 = scmp.lt.s32.totalorder %s2235_s18, %s1885_s30 }
  0xad   : > { %p1887_p4 = pnand %p1886_p2, %p2287_p8  ;;  %p1892_p10 = por %p1891_p5, %p1890_p6 }
  0xaf   : > { %p1888_p3 = pneg %p1887_p4 }
  0xb1   : > { %p1893_p9 = pnand %p1892_p10, %p1888_p3 }
  0xb3   : > { %1896 = shalt.err (!%p1893_p9)  }
  0xb4   : > { %s1897_s9 = scalar_lea.vmem %s334_s19, 512  ;;  %p1904_p12 = scmp.lt.s32.totalorder %s334_s19, %s2245_s5 }
  0xb5   : > { %p1898_p1 = scmp.ne.s32.totalorder %s334_s19, %s1897_s9  ;;  %p1905_p13 = scmp.lt.s32.totalorder %s2248_s22, %s1897_s9 }
  0xb7   : > { %p1899_p7 = pnand %p1898_p1, %p2287_p8  ;;  %p1906_p2 = por %p1905_p13, %p1904_p12 }
  0xb9   : > { %p1900_p11 = pneg %p1899_p7 }
  0xbb   : > { %p1907_p4 = pnand %p1906_p2, %p1900_p11 }
  0xbd   : > { %1910 = shalt.err (!%p1907_p4)  }
  0xbe   : > { %s3176_s13 = scalar_lea.sflag %s2325_s11, 2 [#allocation3]  ;;  %s3249_s28 = smov (!%p2351_p0, %s290_s28), 15 }
  0xbf   : > { %1657 = dma.hbm_to_vmem [thread:$0]  (%p2287_p8), %s321_s20, 512, %s334_s19, %s3176_s13 }
  0xc0   : > { %s1528_s10 = sshll.u32 %s3249_s28, 2  ;;  %s1381_s26 = scalar_lea.sflag %s2325_s11, 4 [#allocation3] }
  0xc1   : > { %s339_s27 = sadd.s32 %s1528_s10, %s2191_s7 }
  0xc2   : > { %s1529_s3 = sshll.u32 %s339_s27, 7 }
  0xc3   : > { %s341_s17 = scalar_lea.hbm %s3108_s0, %s1529_s3 }
  0xc4   : > { %s1911_s30 = scalar_lea.hbm %s341_s17, 512  ;;  %p1916_p10 = scmp.lt.s32.totalorder %s341_s17, %s3108_s0 }
  0xc5   : > { %p1912_p3 = scmp.ne.s32.totalorder %s341_s17, %s1911_s30  ;;  %p1917_p9 = scmp.lt.s32.totalorder %s2235_s18, %s1911_s30 }
  0xc7   : > { %p1913_p6 = pnand %p1912_p3, %p2287_p8  ;;  %p1918_p0 = por %p1917_p9, %p1916_p10 }
  0xc9   : > { %p1914_p5 = pneg %p1913_p6 }
  0xcb   : > { %p1919_p1 = pnand %p1918_p0, %p1914_p5 }
  0xcd   : > { %1922 = shalt.err (!%p1919_p1)  }
  0xce   : > { %s1923_s7 = scalar_lea.vmem %s355_s2, 512  ;;  %p1930_p13 = scmp.lt.s32.totalorder %s355_s2, %s2245_s5 }
  0xcf   : > { %p1924_p7 = scmp.ne.s32.totalorder %s355_s2, %s1923_s7  ;;  %p1931_p2 = scmp.lt.s32.totalorder %s2248_s22, %s1923_s7 }
  0xd1   : > { %p1925_p11 = pnand %p1924_p7, %p2287_p8  ;;  %p1932_p4 = por %p1931_p2, %p1930_p13 }
  0xd3   : > { %p1926_p12 = pneg %p1925_p11 }
  0xd5   : > { %p1933_p3 = pnand %p1932_p4, %p1926_p12 }
  0xd7   : > { %1936 = shalt.err (!%p1933_p3)  }
  0xd8   : > { %1658 = dma.hbm_to_vmem [thread:$0]  (%p2287_p8), %s341_s17, 512, %s355_s2, %s1381_s26 }
  0xd9   : > { %s182_s18 = scalar_lea.vmem [#allocation7], %s2183_s25 }
  0xda   : > { %2003 = dma.done.wait %s2214_s4, 2048 }
  0xdb   : > { %2004 = vsyncadd %s2214_s4, 4294965248  ;;  %s364_s11 = smul.u32 24, %s3243_s8 }
  0xdc   : > { %2005 = dma.done.wait %s2217_s6, 512 }
  0xdd   : > { %2006 = vsyncadd %s2217_s6, 4294966784 }
  0xde   : > { %2007 = dma.done.wait %s2223_s16, 512 }
  0xdf   : > { %2008 = vsyncadd %s2223_s16, 4294966784  ;;  %p3177_p6 = scmp.ne.s32.totalorder %s2027_s15, 0 }
  0xe1   : > { %383 = sbr.rel (%p3177_p6) target bundleno = 233 (0xe9), region = 68 }
  0xe6   : > { %v2053_v0 = vmov 0.0  }
  0xe7   : > { %384 = vst [vmem:[%s2219_s24] sm:$0xff] %v2053_v0  ;;  %385 = vst [vmem:[%s2219_s24 + $0x8] sm:$0xff] %v2053_v0 }
  0xe8   : > { %386 = vst [vmem:[%s2219_s24 + $0x10] sm:$0xff] %v2053_v0  ;;  %387 = vst [vmem:[%s2219_s24 + $0x18] sm:$0xff] %v2053_v0 }
  0xe9 PF: > { %p1534_p8 = scmp.ne.s32.totalorder %s2027_s15, 3 }
  0xeb   : > { %391 = sbr.rel (%p1534_p8) target bundleno = 243 (0xf3), region = 72 }
  0xf0   : > { %v2054_v1 = vmov 0.0  }
  0xf1   : > { %1535 = vst [vmem:[%s2219_s24 + $0xa0] sm:$0xff] %v2054_v1  ;;  %1536 = vst [vmem:[%s2219_s24 + $0xa8] sm:$0xff] %v2054_v1 }
  0xf2   : > { %1537 = vst [vmem:[%s2219_s24 + $0xb0] sm:$0xff] %v2054_v1  ;;  %1538 = vst [vmem:[%s2219_s24 + $0xb8] sm:$0xff] %v2054_v1 }
  0xf3 PF: > { %v2412_v2 = vld [vmem:[#allocation4] sm:$0x77]  ;;  %v2414_v3 = vld [vmem:[#allocation4 + $0x8] sm:$0x77]  ;;  %v2416_v4 = vld [vmem:[#allocation4 + $0x10] sm:$0x77] }
  0xf4   : > { %3178 = vst [vmem:[#allocation39_spill] sm:$0xff] %v2412_v2  ;;  %3179 = vst [vmem:[#allocation40_spill] sm:$0xff] %v2414_v3  ;;  %s3181_s15 = sld [smem:[#allocation47_spill]]  ;;  %s2423_s4 = smov 0  }
  0xf5   : > { %3180 = vst [vmem:[#allocation41_spill] sm:$0xff] %v2416_v4 }
  0xfa   : > { %v2421_v5 = vld [vmem:[%s3181_s15] sm:$0x3] }
  0xfb   : > { %3182 = vst [vmem:[#allocation42_spill] sm:$0xff] %v2421_v5 }
  0xfc LB: >> { %v3184_v2 = vld [vmem:[#allocation39_spill] sm:$0xff]  ;;  %v3185_v3 = vld [vmem:[#allocation40_spill] sm:$0xff]  ;;  %v3186_v4 = vld [vmem:[#allocation41_spill] sm:$0xff]  ;;  %v3129_v6 = vlaneseq  ;;  %s1642_s24 = sshll.u32 %s2047_s4, 3  ;;  %vm496_vm0 = vcmask 1046528   ;;  %vm567_vm1 = vcmask 1045504   ;;  %s2047_s4 = sphi %s2423_s4, %s405_s4  }
  0xfd   : >> { %s408_s6 = sadd.s32 %s1642_s24, %s364_s11  ;;  %v2055_v14 = vmov 1966171168   ;;  %s1645_s29 = sshll.u32 %s2047_s4, 6  ;;  %vm999_vm2 = vcmask 1040384  }
  0xfe   : >> { %v2430_v7 = vshrl.u32 %v3129_v6, 7  ;;  %s1541_s16 = sshll.u32 %s408_s6, 3  ;;  %v2452_v15 = vunpack.c.l.s4 %v2055_v14  ;;  %s2692_s20 = scalar_lea.vmem %s182_s18, %s1645_s29 [#allocation7] }
  0xff   : >> { %s2454_s22 = scalar_lea.vmem [#allocation2], %s1541_s16  ;;  %s405_s4 = sadd.s32 1, %s2047_s4  }
 0x100   : >> { %3187 = vst [vmem:[#allocation43_spill] sm:$0xff] %v2430_v7  ;;  %v2435_v8 = vsub.s32 0, %v2430_v7  ;;  %v2438_v9 = vsub.s32 1, %v2430_v7  ;;  %v2441_v10 = vsub.s32 2, %v2430_v7  ;;  %v2444_v11 = vsub.s32 4, %v2430_v7  ;;  %v411_v16 = vld [vmem:[%s2454_s22] sm:$0xff] }
 0x101   : >> { %v2447_v12 = vsub.s32 5, %v2430_v7  ;;  %v2450_v13 = vsub.s32 6, %v2430_v7  ;;  %v454_v21 = vld [vmem:[%s2454_s22] sm:$0xfe]  ;;  %v456_v22 = vld [vmem:[%s2454_s22 + $0x10] sm:$0x7f] }
 0x102   : >> { %v3183_v5 = vld [vmem:[#allocation42_spill] sm:$0xff]  ;;  %v423_v17 = vrot.slane %v3184_v2, %v2435_v8  ;;  %v465_v18 = vrot.slane %v3184_v2, %v2438_v9  ;;  %v536_v19 = vrot.slane %v3184_v2, %v2441_v10  ;;  %v613_v20 = vrot.slane %v3185_v3, %v2435_v8  ;;  %v525_v23 = vld [vmem:[%s2454_s22] sm:$0xfc]  ;;  %p402_p5 = scmp.ge.s32.totalorder %s405_s4, 2  }
 0x103   : >> { %v655_v24 = vrot.slane %v3185_v3, %v2438_v9  ;;  %v725_v25 = vrot.slane %v3185_v3, %v2441_v10  ;;  %v801_v26 = vrot.slane %v3186_v4, %v2435_v8  ;;  %v843_v27 = vrot.slane %v3186_v4, %v2438_v9  ;;  %v527_v30 = vld [vmem:[%s2454_s22 + $0x10] sm:$0xff]  ;;  %v1553_v33 = vld [vmem:[%s2454_s22 + $0x20] sm:$0xfe]  ;;  %s3215_s19 = sld [smem:[#allocation38_spill]] (%p402_p5)  ;;  %s1239_s14 = sshll.u32 (%p402_p5), %s182_s18, 4  ;;  %s3053_s14 = int_to_ptr.vmem [resolvable:$true] %s1239_s14 }
 0x104   : >> { %v2477_v28 = vrot.slane %v423_v17, %v2435_v8  ;;  %v2480_v29 = vrot.slane %v465_v18, %v2438_v9  ;;  %v2484_v31 = vrot.slane %v536_v19, %v2441_v10  ;;  %v2487_v32 = vrot.slane %v613_v20, %v2435_v8  ;;  %v1555_v34 = vld [vmem:[%s2454_s22 + $0x30] sm:$0x7f]  ;;  %v1561_v36 = vld [vmem:[%s2454_s22 + $0x20] sm:$0xfc]  ;;  %s3217_s13 = sld [smem:[#allocation48_spill]] (%p402_p5)  ;;  %s1937_s8 = scalar_lea.vmem (%p402_p5), %s3053_s14, 2048 }
 0x105   : >> { %v2492_v35 = vrot.slane %v655_v24, %v2438_v9  ;;  %v2496_v37 = vrot.slane %v725_v25, %v2441_v10  ;;  %v2499_v38 = vrot.slane %v801_v26, %v2435_v8  ;;  %v2502_v39 = vrot.slane %v843_v27, %v2438_v9  ;;  %v2511_v44 = vld [vmem:[%s2454_s22 + $0x20] sm:$0xff]  ;;  %v2525_v53 = vld [vmem:[%s2454_s22 + $0x30] sm:$0xff]  ;;  %s3219_s26 = sld [smem:[#allocation28_spill]] (%p402_p5)  ;;  %p1938_p10 = scmp.ne.s32.totalorder (%p402_p5), %s3053_s14, %s1937_s8 }
 0x106   : >> { %v438_v40 = vmul.f32 %v2477_v28, %v411_v16  ;;  %v480_v41 = vmul.f32 %v2480_v29, %v454_v21  ;;  %v2507_v42 = vmul.f32 %v2480_v29, %v456_v22  ;;  %v551_v43 = vmul.f32 %v2484_v31, %v525_v23  ;;  %v1580_v49 = vld [vmem:[%s2454_s22 + $0x40] sm:$0xfe]  ;;  %v1582_v60 = vld [vmem:[%s2454_s22 + $0x50] sm:$0x7f]  ;;  %s3220_s27 = sld [smem:[#allocation34_spill]] (%p402_p5)  ;;  %s2056_s30 = smov (%p402_p5), [#allocation7]  }
 0x107   : >> { %v2514_v45 = vmul.f32 %v2484_v31, %v527_v30  ;;  %v628_v46 = vmul.f32 %v2511_v44, %v2487_v32  ;;  %v670_v47 = vmul.f32 %v1553_v33, %v2492_v35  ;;  %v2520_v48 = vmul.f32 %v1555_v34, %v2492_v35  ;;  %v2535_v59 = vld [vmem:[%s2454_s22 + $0x40] sm:$0xff]  ;;  %v412_v33 = vld [vmem:[%s2454_s22 + $0x8] sm:$0xff]  ;;  %s1941_s23 = sshll.u32 (%p402_p5), %s2056_s30, 4  ;;  %s1942_s23 = int_to_ptr.vmem [resolvable:$false] %s1941_s23 }
 0x108   : >> { %v497_v50 = vrot.slane %v480_v41, 1  ;;  %v3138_v51 = vrot.slane %v2507_v42, 1  ;;  %v568_v52 = vrot.slane %v551_v43, 2  ;;  %v740_v54 = vmul.f32 %v1561_v36, %v2496_v37  ;;  %v1588_v24 = vld [vmem:[%s2454_s22 + $0x40] sm:$0xfc]  ;;  %s1943_s1 = scalar_lea.vmem (%p402_p5), %s1942_s23, 4096  ;;  %p1944_p7 = scmp.lt.s32.totalorder (%p402_p5), %s3053_s14, %s1942_s23 }
 0x109   : >> { %v3136_v55 = vrot.slane %v2514_v45, 2  ;;  %v686_v56 = vrot.slane %v670_v47, 1  ;;  %v3134_v57 = vrot.slane %v2520_v48, 1  ;;  %v2532_v58 = vmul.f32 %v2525_v53, %v2496_v37  ;;  %v455_v34 = vld [vmem:[%s2454_s22 + $0x8] sm:$0xfe]  ;;  %v2580_v47 = vld [vmem:[%s2454_s22 + $0x50] sm:$0xff]  ;;  %p1945_p11 = scmp.lt.s32.totalorder (%p402_p5), %s1943_s1, %s1937_s8 }
 0x10a   : >> { %v499_v61 = vsel %vm496_vm0, %v497_v50, %v3138_v51  ;;  %v756_v62 = vrot.slane %v740_v54, 2  ;;  %v816_v63 = vmul.f32 %v2535_v59, %v2499_v38  ;;  %v858_v0 = vmul.f32 %v1580_v49, %v2502_v39  ;;  %v457_v36 = vld [vmem:[%s2454_s22 + $0x18] sm:$0x7f]  ;;  %s3216_s28 = sshll.u32 (%p402_p5), %s3215_s19, 7  ;;  %s3218_s10 = smov (%p402_p5), %s3217_s13 }
 0x10b   : >> { %v517_v1 = vadd.f32 %v499_v61, %v438_v40  ;;  %v570_v14 = vsel %vm567_vm1, %v568_v52, %v3136_v55  ;;  %v688_v16 = vsel %vm496_vm0, %v686_v56, %v3134_v57  ;;  %v3132_v17 = vrot.slane %v2532_v58, 2  ;;  %v526_v52 = vld [vmem:[%s2454_s22 + $0x8] sm:$0xfc]  ;;  %v528_v54 = vld [vmem:[%s2454_s22 + $0x18] sm:$0xff]  ;;  %v1574_v57 = vld [vmem:[%s2454_s22 + $0x50] sm:$0x3f]  ;;  %s3049_s3 = scalar_lea.hbm (%p402_p5), %s3217_s13, %s3216_s28  ;;  %p1946_p12 = por (%p402_p5), %p1945_p11, %p1944_p7 }
 0x10c   : >> { %v2552_v18 = vmul.f32 %v1582_v60, %v2502_v39  ;;  %v874_v19 = vrot.slane %v858_v0, 1  ;;  %v913_v20 = vrot.slane %v3186_v4, %v2441_v10  ;;  %v2558_v21 = vrot.slane %v3183_v5, %v2435_v8  ;;  %s3221_s21 = sand.u32 (%p402_p5), 1, %s3219_s26   ;;  %p3222_p9 = scmp.ne.s32.totalorder (%p402_p5), %s3220_s27, 0 }
 0x10d   : >> { %v588_v22 = vadd.f32 %v570_v14, %v517_v1  ;;  %v758_v23 = vsel %vm567_vm1, %v756_v62, %v3132_v17  ;;  %v427_v25 = vrot.slane %v3184_v2, %v2444_v11  ;;  %v469_v26 = vrot.slane %v3184_v2, %v2447_v12  ;;  %s3057_s17 = scalar_lea.sflag (%p402_p5), [#allocation6], %s3221_s21 }
 0x10e   : >> { %v3131_v27 = vrot.slane %v2552_v18, 1  ;;  %v2570_v30 = vrot.slane %v913_v20, %v2441_v10  ;;  %v540_v40 = vrot.slane %v3184_v2, %v2450_v13  ;;  %v617_v41 = vrot.slane %v3185_v3, %v2444_v11  ;;  %p1939_p0 = pnand (%p402_p5), %p1938_p10, %p3222_p9 }
 0x10f   : >> { %v636_v43 = vadd.f32 %v628_v46, %v588_v22  ;;  %v2583_v49 = vrot.slane %v427_v25, %v2435_v8  ;;  %v2586_v50 = vrot.slane %v469_v26, %v2438_v9  ;;  %v659_v56 = vrot.slane %v3185_v3, %v2447_v12 }
 0x110   : >> { %v876_v60 = vsel %vm496_vm0, %v874_v19, %v3131_v27  ;;  %v928_v46 = vmul.f32 %v1588_v24, %v2570_v30  ;;  %v2598_v61 = vmul.f32 %v2580_v47, %v2570_v30  ;;  %v2601_v62 = vrot.slane %v540_v40, %v2441_v10  ;;  %v2654_v27 = vld [vmem:[%s2454_s22 + $0x38] sm:$0xff]  ;;  %p1940_p1 = pneg (%p402_p5), %p1939_p0 }
 0x111   : >> { %v706_v0 = vadd.f32 %v688_v16, %v636_v43  ;;  %v439_v1 = vmul.f32 %v2583_v49, %v412_v33  ;;  %v481_v14 = vmul.f32 %v2586_v50, %v455_v34  ;;  %v2606_v20 = vmul.f32 %v2586_v50, %v457_v36  ;;  %v1554_v34 = vld [vmem:[%s2454_s22 + $0x28] sm:$0xfe]  ;;  %v1556_v43 = vld [vmem:[%s2454_s22 + $0x38] sm:$0x7f] }
 0x112   : >> { %v944_v19 = vrot.slane %v928_v46, 2  ;;  %v3130_v22 = vrot.slane %v2598_v61, 2  ;;  %v552_v24 = vmul.f32 %v2601_v62, %v526_v52  ;;  %v2611_v25 = vmul.f32 %v2601_v62, %v528_v54  ;;  %v2624_v54 = vld [vmem:[%s2454_s22 + $0x28] sm:$0xff]  ;;  %p1947_p13 = pnand (%p402_p5), %p1946_p12, %p1940_p1 }
 0x113   : >> { %v776_v26 = vadd.f32 %v758_v23, %v706_v0  ;;  %v500_v40 = vrot.slane %v481_v14, 1  ;;  %v3137_v16 = vrot.slane %v2606_v20, 1  ;;  %v2615_v33 = vrot.slane %v617_v41, %v2435_v8 }
 0x114   : >> { %v946_v36 = vsel %vm567_vm1, %v944_v19, %v3130_v22  ;;  %v571_v46 = vrot.slane %v552_v24, 2  ;;  %v3135_v52 = vrot.slane %v2611_v25, 2  ;;  %v2627_v23 = vrot.slane %v659_v56, %v2438_v9 }
 0x115   : >> { %v824_v0 = vadd.f32 %v816_v63, %v776_v26  ;;  %v502_v41 = vsel %vm496_vm0, %v500_v40, %v3137_v16  ;;  %v629_v14 = vmul.f32 %v2624_v54, %v2615_v33  ;;  %v729_v19 = vrot.slane %v3185_v3, %v2450_v13  ;;  %v1562_v26 = vld [vmem:[%s2454_s22 + $0x28] sm:$0xfc] }
 0x116   : >> { %v518_v24 = vadd.f32 %v502_v41, %v439_v1  ;;  %v573_v6 = vsel %vm567_vm1, %v571_v46, %v3135_v52  ;;  %v671_v56 = vmul.f32 %v1554_v34, %v2627_v23  ;;  %v2641_v63 = vmul.f32 %v1556_v43, %v2627_v23 }
 0x117   : >> { %v894_v40 = vadd.f32 %v876_v60, %v824_v0  ;;  %v2645_v22 = vrot.slane %v729_v19, %v2441_v10  ;;  %v805_v1 = vrot.slane %v3186_v4, %v2444_v11  ;;  %v847_v41 = vrot.slane %v3186_v4, %v2447_v12 }
 0x118   : >> { %v589_v34 = vadd.f32 %v573_v6, %v518_v24  ;;  %v689_v46 = vrot.slane %v671_v56, 1  ;;  %v3133_v43 = vrot.slane %v2641_v63, 1  ;;  %v917_v60 = vrot.slane %v3186_v4, %v2450_v13  ;;  %v1581_v6 = vld [vmem:[%s2454_s22 + $0x48] sm:$0xfe]  ;;  %v1583_v24 = vld [vmem:[%s2454_s22 + $0x58] sm:$0x7f] }
 0x119   : >> { %v964_v0 = vadd.f32 %v946_v36, %v894_v40  ;;  %v741_v19 = vmul.f32 %v1562_v26, %v2645_v22  ;;  %v2661_v11 = vmul.f32 %v2654_v27, %v2645_v22  ;;  %v2664_v12 = vrot.slane %v805_v1, %v2435_v8  ;;  %v1589_v56 = vld [vmem:[%s2454_s22 + $0x48] sm:$0xfc]  ;;  %v1575_v4 = vld [vmem:[%s2454_s22 + $0x58] sm:$0x3f] }
 0x11a   : >> { %v637_v17 = vadd.f32 %v629_v14, %v589_v34  ;;  %v691_v13 = vsel %vm496_vm0, %v689_v46, %v3133_v43  ;;  %v2673_v36 = vld [vmem:[%s2454_s22 + $0x48] sm:$0xff]  ;;  %v2676_v26 = vrot.slane %v847_v41, %v2438_v9  ;;  %v2679_v40 = vrot.slane %v917_v60, %v2441_v10  ;;  %v2688_v46 = vld [vmem:[%s2454_s22 + $0x58] sm:$0xff]  ;;  %v1547_v43 = vld [vmem:[%s2454_s22 + $0x30] sm:$0x3f] }
 0x11b   : >> { %v2682_v8 = vadd.f32 %v2558_v21, %v964_v0  ;;  %v759_v1 = vrot.slane %v741_v19, 2  ;;  %v3140_v14 = vrot.slane %v2661_v11, 2  ;;  %v817_v34 = vmul.f32 %v2673_v36, %v2664_v12  ;;  %v413_v19 = vld [vmem:[%s2454_s22 + $0x10] sm:$0x3f] }
 0x11c   : >> { %3188 = vst [vmem:[#allocation44_spill] sm:$0xff] %v2676_v26  ;;  %3189 = vst [vmem:[#allocation45_spill] sm:$0xff] %v2679_v40  ;;  %v707_v41 = vadd.f32 %v691_v13, %v637_v17  ;;  %v859_v10 = vmul.f32 %v1581_v6, %v2676_v26  ;;  %v2696_v60 = vmul.f32 %v1583_v24, %v2676_v26  ;;  %v414_v24 = vld [vmem:[%s2454_s22 + $0x18] sm:$0x3f]  ;;  %v1557_v26 = vld [vmem:[%s2454_s22 + $0x40] sm:$0xfe] }
 0x11d   : >> { %v929_v0 = vmul.f32 %v1589_v56, %v2679_v40  ;;  %v761_v55 = vsel %vm567_vm1, %v759_v1, %v3140_v14  ;;  %v2708_v17 = vmul.f32 %v2688_v46, %v2679_v40  ;;  %v2712_v6 = vrot.slane %v3183_v5, %v2438_v9  ;;  %v1548_v56 = vld [vmem:[%s2454_s22 + $0x38] sm:$0x3f]  ;;  %v458_v5 = vld [vmem:[%s2454_s22 + $0x20] sm:$0xfe] }
 0x11e   : >> { %v777_v13 = vadd.f32 %v761_v55, %v707_v41  ;;  %v877_v16 = vrot.slane %v859_v10, 1  ;;  %v3148_v51 = vrot.slane %v2696_v60, 1  ;;  %v3190_v1 = vrot.slane %v2682_v8, 7  ;;  %v460_v55 = vld [vmem:[%s2454_s22 + $0x30] sm:$0x7f] }
 0x11f   : >> { %v947_v52 = vrot.slane %v929_v0, 2  ;;  %v440_v3 = vmul.f32 %v2477_v28, %v413_v19  ;;  %v630_v2 = vmul.f32 %v1547_v43, %v2487_v32  ;;  %v818_v9 = vmul.f32 %v1574_v57, %v2499_v38  ;;  %v529_v14 = vld [vmem:[%s2454_s22 + $0x20] sm:$0xfc] }
 0x120   : >> { %1022 = vst [vmem:[%s2692_s20] sm:$0xfe] %v3190_v1  ;;  %v825_v41 = vadd.f32 %v817_v34, %v777_v13  ;;  %v879_v10 = vsel %vm496_vm0, %v877_v16, %v3148_v51  ;;  %v441_v0 = vmul.f32 %v2583_v49, %v414_v24  ;;  %v631_v1 = vmul.f32 %v1548_v56, %v2615_v33 }
 0x121   : >> { %v3191_v19 = vrot.slane %v2708_v17, 2  ;;  %v3192_v57 = vrot.slane %v2507_v42, 1  ;;  %v819_v40 = vmul.f32 %v1575_v4, %v2664_v12  ;;  %v442_v34 = vmul.f32 %v2511_v44, %v2477_v28 }
 0x122   : >> { %v895_v13 = vadd.f32 %v879_v10, %v825_v41  ;;  %v3193_v16 = vrot.slane %v2606_v20, 1  ;;  %v484_v51 = vmul.f32 %v2480_v29, %v458_v5  ;;  %v2745_v56 = vmul.f32 %v2480_v29, %v460_v55  ;;  %v1559_v20 = vld [vmem:[%s2454_s22 + $0x50] sm:$0x7f] }
 0x123   : >> { %v949_v43 = vsel %vm567_vm1, %v947_v52, %v3191_v19  ;;  %v519_v7 = vadd.f32 %v3192_v57, %v440_v3  ;;  %v3194_v52 = vrot.slane %v2514_v45, 2  ;;  %v555_v3 = vmul.f32 %v2484_v31, %v529_v14 }
 0x124   : >> { %v520_v24 = vadd.f32 %v3193_v16, %v441_v0  ;;  %v2753_v4 = vmul.f32 %v2525_v53, %v2484_v31  ;;  %v632_v44 = vmul.f32 %v2535_v59, %v2487_v32  ;;  %v965_v5 = vadd.f32 %v949_v43, %v895_v13  ;;  %v1565_v53 = vld [vmem:[%s2454_s22 + $0x40] sm:$0xfc] }
 0x125   : >> { %v590_v42 = vadd.f32 %v3194_v52, %v519_v7  ;;  %v3195_v41 = vrot.slane %v2611_v25, 2  ;;  %v503_v55 = vrot.slane %v484_v51, 1  ;;  %v504_v45 = vrot.slane %v2745_v56, 1  ;;  %v1584_v13 = vld [vmem:[%s2454_s22 + $0x60] sm:$0xfe] }
 0x126   : >> { %v574_v10 = vrot.slane %v555_v3, 2  ;;  %v575_v14 = vrot.slane %v2753_v4, 2  ;;  %v674_v31 = vmul.f32 %v1557_v26, %v2492_v35  ;;  %v2765_v0 = vadd.f32 %v2712_v6, %v965_v5  ;;  %v3209_v4 = vld [vmem:[#allocation40_spill] sm:$0xff] }
 0x127   : >> { %v591_v29 = vadd.f32 %v3195_v41, %v520_v24  ;;  %v638_v7 = vadd.f32 %v630_v2, %v590_v42  ;;  %v505_v25 = vsel %vm496_vm0, %v503_v55, %v504_v45  ;;  %v2771_v51 = vmul.f32 %v1559_v20, %v2492_v35  ;;  %v1576_v2 = vld [vmem:[%s2454_s22 + $0x60] sm:$0xff]  ;;  %v1594_v55 = vld [vmem:[%s2454_s22 + $0x70] sm:$0xff] }
 0x128   : >> { %v3196_v19 = vrot.slane %v2520_v48, 1  ;;  %v521_v26 = vadd.f32 %v505_v25, %v442_v34  ;;  %v576_v57 = vsel %vm567_vm1, %v574_v10, %v575_v14  ;;  %v1001_v16 = vrot.slane %v2765_v0, 7  ;;  %v1586_v48 = vld [vmem:[%s2454_s22 + $0x70] sm:$0x7f] }
 0x129   : >> { %v639_v59 = vadd.f32 %v631_v1, %v591_v29  ;;  %v692_v1 = vrot.slane %v674_v31, 1  ;;  %v3197_v24 = vrot.slane %v2641_v63, 1  ;;  %v693_v52 = vrot.slane %v2771_v51, 1  ;;  %v1592_v29 = vld [vmem:[%s2454_s22 + $0x60] sm:$0xfc] }
 0x12a   : >> { %v708_v43 = vadd.f32 %v3196_v19, %v638_v7  ;;  %v744_v42 = vmul.f32 %v1565_v53, %v2496_v37  ;;  %v3198_v3 = vrot.slane %v2532_v58, 2  ;;  %v592_v34 = vadd.f32 %v576_v57, %v521_v26  ;;  %1023 = vst [vmem:[%s2692_s20 + $0x8] sm:$0xfe] %v1001_v16  ;;  %v417_v0 = vld [vmem:[%s2454_s22 + $0x30] sm:$0x3f] }
 0x12b   : >> { %v709_v35 = vadd.f32 %v3197_v24, %v639_v59  ;;  %v2790_v5 = vmul.f32 %v2580_v47, %v2496_v37  ;;  %v820_v41 = vmul.f32 %v1576_v2, %v2499_v38  ;;  %v3199_v63 = vrot.slane %v2661_v11, 2 }
 0x12c   : >> { %v778_v20 = vadd.f32 %v3198_v3, %v708_v43  ;;  %v694_v58 = vsel %vm496_vm0, %v692_v1, %v693_v52  ;;  %v762_v10 = vrot.slane %v744_v42, 2  ;;  %v862_v37 = vmul.f32 %v1584_v13, %v2502_v39  ;;  %v459_v43 = vld [vmem:[%s2454_s22 + $0x28] sm:$0xfe] }
 0x12d   : >> { %v779_v7 = vadd.f32 %v3199_v63, %v709_v35  ;;  %v640_v31 = vadd.f32 %v632_v44, %v592_v34  ;;  %v763_v53 = vrot.slane %v2790_v5, 2  ;;  %v2806_v59 = vmul.f32 %v1586_v48, %v2502_v39  ;;  %v461_v44 = vld [vmem:[%s2454_s22 + $0x38] sm:$0x7f] }
 0x12e   : >> { %v826_v47 = vadd.f32 %v818_v9, %v778_v20  ;;  %v880_v2 = vrot.slane %v862_v37, 1  ;;  %v932_v11 = vmul.f32 %v1592_v29, %v2570_v30  ;;  %v2810_v19 = vmul.f32 %v1594_v55, %v2570_v30 }
 0x12f   : >> { %v827_v25 = vadd.f32 %v819_v40, %v779_v7  ;;  %v3200_v26 = vrot.slane %v2552_v18, 1  ;;  %v710_v1 = vadd.f32 %v694_v58, %v640_v31  ;;  %v764_v9 = vsel %vm567_vm1, %v762_v10, %v763_v53  ;;  %v530_v40 = vld [vmem:[%s2454_s22 + $0x28] sm:$0xfc] }
 0x130   : >> { %v881_v39 = vrot.slane %v2806_v59, 1  ;;  %v3201_v13 = vrot.slane %v2696_v60, 1  ;;  %v950_v35 = vrot.slane %v932_v11, 2  ;;  %v951_v30 = vrot.slane %v2810_v19, 2 }
 0x131   : >> { %v896_v57 = vadd.f32 %v3200_v26, %v826_v47  ;;  %v443_v18 = vmul.f32 %v2624_v54, %v2583_v49  ;;  %v3202_v42 = vrot.slane %v2598_v61, 2  ;;  %v780_v3 = vadd.f32 %v764_v9, %v710_v1  ;;  %v1558_v54 = vld [vmem:[%s2454_s22 + $0x48] sm:$0xfe] }
 0x132   : >> { %v897_v24 = vadd.f32 %v3201_v13, %v827_v25  ;;  %v882_v20 = vsel %vm496_vm0, %v880_v2, %v881_v39  ;;  %v485_v34 = vmul.f32 %v2586_v50, %v459_v43  ;;  %v3203_v60 = vrot.slane %v2708_v17, 2  ;;  %v1560_v17 = vld [vmem:[%s2454_s22 + $0x58] sm:$0x7f]  ;;  %v1566_v47 = vld [vmem:[%s2454_s22 + $0x48] sm:$0xfc] }
 0x133   : >> { %v966_v48 = vadd.f32 %v3202_v42, %v896_v57  ;;  %v952_v55 = vsel %vm567_vm1, %v950_v35, %v951_v30  ;;  %v2838_v63 = vmul.f32 %v2586_v50, %v461_v44  ;;  %v556_v61 = vmul.f32 %v2601_v62, %v530_v40  ;;  %v1587_v35 = vld [vmem:[%s2454_s22 + $0x78] sm:$0x7f] }
 0x134   : >> { %v967_v29 = vadd.f32 %v3203_v60, %v897_v24  ;;  %v828_v58 = vadd.f32 %v820_v41, %v780_v3  ;;  %v506_v10 = vrot.slane %v485_v34, 1  ;;  %v2845_v37 = vmul.f32 %v2654_v27, %v2601_v62  ;;  %v1585_v24 = vld [vmem:[%s2454_s22 + $0x68] sm:$0xfe] }
 0x135   : >> { %v985_v7 = vadd.f32 %v2558_v21, %v966_v48  ;;  %v507_v25 = vrot.slane %v2838_v63, 1  ;;  %v577_v50 = vrot.slane %v556_v61, 2  ;;  %v633_v2 = vmul.f32 %v2673_v36, %v2615_v33  ;;  %v1593_v3 = vld [vmem:[%s2454_s22 + $0x68] sm:$0xfc] }
 0x136   : >> { %v986_v31 = vadd.f32 %v2712_v6, %v967_v29  ;;  %v898_v41 = vadd.f32 %v882_v20, %v828_v58  ;;  %v578_v43 = vrot.slane %v2845_v37, 2  ;;  %v675_v27 = vmul.f32 %v1558_v54, %v2627_v23  ;;  %v1595_v20 = vld [vmem:[%s2454_s22 + $0x78] sm:$0xff]  ;;  %v3206_v58 = vld [vmem:[#allocation45_spill] sm:$0xff]  ;;  %v1551_v37 = vld [vmem:[%s2454_s22 + $0x50] sm:$0x3f] }
 0x137   : >> { %v1002_v11 = vrot.slane %v985_v7, 7  ;;  %v508_v26 = vsel %vm496_vm0, %v506_v10, %v507_v25  ;;  %v2857_v57 = vmul.f32 %v1560_v17, %v2627_v23  ;;  %v745_v1 = vmul.f32 %v1566_v47, %v2645_v22  ;;  %v418_v17 = vld [vmem:[%s2454_s22 + $0x38] sm:$0x3f] }
 0x138   : >> { %v1004_v62 = vrot.slane %v986_v31, 7  ;;  %v3204_v9 = vrot.slane %v2682_v8, 7  ;;  %v968_v44 = vadd.f32 %v952_v55, %v898_v41  ;;  %v522_v40 = vadd.f32 %v508_v26, %v443_v18  ;;  %v3205_v55 = vld [vmem:[#allocation44_spill] sm:$0xff]  ;;  %v1552_v26 = vld [vmem:[%s2454_s22 + $0x58] sm:$0x3f] }
 0x139   : >> { %v579_v13 = vsel %vm567_vm1, %v577_v50, %v578_v43  ;;  %v695_v42 = vrot.slane %v675_v27, 1  ;;  %v696_v48 = vrot.slane %v2857_v57, 1  ;;  %v2873_v8 = vmul.f32 %v2688_v46, %v2645_v22  ;;  %v1577_v46 = vld [vmem:[%s2454_s22 + $0x68] sm:$0xff] }
 0x13a   : >> { %v1003_v36 = vsel %vm999_vm2, %v3204_v9, %v1002_v11  ;;  %v1005_v23 = vsel %vm999_vm2, %v1001_v16, %v1004_v62  ;;  %v2879_v18 = vadd.f32 %v2558_v21, %v968_v44  ;;  %v593_v34 = vadd.f32 %v579_v13, %v522_v40  ;;  %v1578_v13 = vld [vmem:[%s2454_s22 + $0x70] sm:$0x3f]  ;;  %v1597_v57 = vld [vmem:[%s2454_s22 + $0x20] ss:$8 sm:$0x3] }
 0x13b   : >> { %1024 = vst [vmem:[%s2692_s20 + $0x10] sm:$0x7f] %v1003_v36  ;;  %1025 = vst [vmem:[%s2692_s20 + $0x18] sm:$0x7f] %v1005_v23  ;;  %v765_v60 = vrot.slane %v745_v1, 2  ;;  %v1047_v16 = vunpack.c.0.s8 %v2452_v15  ;;  %v697_v29 = vsel %vm496_vm0, %v695_v42, %v696_v48  ;;  %v766_v22 = vrot.slane %v2873_v8, 2 }
 0x13c   : >> { %v863_v63 = vmul.f32 %v1585_v24, %v3205_v55  ;;  %v2890_v61 = vmul.f32 %v1587_v35, %v3205_v55  ;;  %v1006_v54 = vrot.slane %v2879_v18, 7  ;;  %v641_v7 = vadd.f32 %v633_v2, %v593_v34  ;;  %v1579_v23 = vld [vmem:[%s2454_s22 + $0x78] sm:$0x3f] }
 0x13d   : >> { %v933_v10 = vmul.f32 %v1593_v3, %v3206_v58  ;;  %v2895_v15 = vmul.f32 %v1595_v20, %v3206_v58  ;;  %v767_v47 = vsel %vm567_vm1, %v765_v60, %v766_v22  ;;  %v444_v11 = vmul.f32 %v2477_v28, %v417_v0  ;;  %v3207_v42 = vld [vmem:[#allocation43_spill] sm:$0xff]  ;;  %v3210_v0 = vld [vmem:[#allocation41_spill] sm:$0xff] }
 0x13e   : >> { %v883_v31 = vrot.slane %v863_v63, 1  ;;  %v884_v50 = vrot.slane %v2890_v61, 1  ;;  %1026 = vst [vmem:[%s2692_s20 + $0x20] sm:$0xfe] %v1006_v54  ;;  %v711_v2 = vadd.f32 %v697_v29, %v641_v7  ;;  %v821_v41 = vmul.f32 %v1577_v46, %v2664_v12  ;;  %v3208_v20 = vld [vmem:[#allocation39_spill] sm:$0xff] }
 0x13f   : >> { %v953_v27 = vrot.slane %v933_v10, 2  ;;  %v954_v62 = vrot.slane %v2895_v15, 2  ;;  %v523_v1 = vadd.f32 %v504_v45, %v444_v11  ;;  %v634_v9 = vmul.f32 %v1551_v37, %v2487_v32  ;;  %v1030_v7 = vld [vmem:[%s2454_s22] ss:$8 sm:$0x3] }
 0x140   : >> { %v445_v36 = vmul.f32 %v2583_v49, %v418_v17  ;;  %v781_v44 = vadd.f32 %v767_v47, %v711_v2  ;;  %v885_v28 = vsel %vm496_vm0, %v883_v31, %v884_v50  ;;  %v635_v35 = vmul.f32 %v1552_v26, %v2615_v33  ;;  %v1598_v58 = vld [vmem:[%s2454_s22 + $0x1] ss:$8 sm:$0x3]  ;;  %v1604_v47 = vld [vmem:[%s2454_s22 + $0x20] ss:$8 sm:$0x3] }
 0x141   : >> { %v594_v40 = vadd.f32 %v575_v14, %v523_v1  ;;  %v1050_v56 = vsub.s32 %v1047_v16, %v3207_v42  ;;  %v955_v32 = vsel %vm567_vm1, %v953_v27, %v954_v62  ;;  %v823_v33 = vmul.f32 %v1579_v23, %v2664_v12  ;;  %v1606_v31 = vld [vmem:[%s2454_s22 + $0x21] ss:$8 sm:$0x3] }
 0x142   : >> { %v524_v24 = vadd.f32 %v507_v25, %v445_v36  ;;  %v829_v45 = vadd.f32 %v821_v41, %v781_v44  ;;  %v822_v25 = vmul.f32 %v1578_v13, %v2499_v38  ;;  %v1599_v1 = vld [vmem:[%s2454_s22 + $0x21] ss:$8 sm:$0x3] }
 0x143   : >> { %v642_v49 = vadd.f32 %v634_v9, %v594_v40  ;;  %v1051_v34 = vrot.slane %v3208_v20, %v1050_v56  ;;  %v1108_v14 = vrot.slane %v3209_v4, %v1050_v56  ;;  %v1165_v16 = vrot.slane %v3210_v0, %v1050_v56  ;;  %v1605_v9 = vld [vmem:[%s2454_s22 + $0x40] ss:$8 sm:$0x3]  ;;  %v1607_v42 = vld [vmem:[%s2454_s22 + $0x41] ss:$8 sm:$0x3] }
 0x144   : >> { %v595_v3 = vadd.f32 %v578_v43, %v524_v24  ;;  %v899_v60 = vadd.f32 %v885_v28, %v829_v45  ;;  %v1612_v40 = vld [vmem:[%s2454_s22 + $0x40] ss:$8 sm:$0x3]  ;;  %v1602_v4 = vld [vmem:[%s2454_s22 + $0x17] ss:$8 sm:$0x3] }
 0x145   : >> { %v712_v29 = vadd.f32 %v693_v52, %v642_v49  ;;  %v1052_v55 = vcombine.high %v1051_v34, %v1051_v34  ;;  %v2933_v63 = vrot.slane %v1051_v34, %v1050_v56  ;;  %v1109_v10 = vcombine.high %v1108_v14, %v1108_v14  ;;  %v1613_v49 = vld [vmem:[%s2454_s22 + $0x60] ss:$8 sm:$0x3] }
 0x146   : >> { %v643_v46 = vadd.f32 %v635_v35, %v595_v3  ;;  %v969_v43 = vadd.f32 %v955_v32, %v899_v60  ;;  %v2937_v37 = vrot.slane %v1108_v14, %v1050_v56  ;;  %v1166_v38 = vcombine.high %v1165_v16, %v1165_v16  ;;  %v1614_v35 = vld [vmem:[%s2454_s22 + $0x41] ss:$8 sm:$0x3]  ;;  %v1600_v3 = vld [vmem:[%s2454_s22 + $0x16] ss:$8 sm:$0x3] }
 0x147   : >> { %v782_v12 = vadd.f32 %v763_v53, %v712_v29  ;;  %v2943_v52 = vrot.slane %v1052_v55, %v1050_v56  ;;  %v1072_v17 = vcombine.high %v2933_v63, %v2933_v63  ;;  %v2952_v2 = vrot.slane %v1109_v10, %v1050_v56  ;;  %v1608_v14 = vld [vmem:[%s2454_s22 + $0x36] ss:$8 sm:$0x3] }
 0x148   : >> { %v713_v51 = vadd.f32 %v696_v48, %v643_v46  ;;  %v2950_v11 = vadd.f32 %v2712_v6, %v969_v43  ;;  %v1129_v5 = vcombine.high %v2937_v37, %v2937_v37  ;;  %v2956_v53 = vrot.slane %v1165_v16, %v1050_v56  ;;  %v1610_v46 = vld [vmem:[%s2454_s22 + $0x37] ss:$8 sm:$0x3]  ;;  %v1601_v55 = vld [vmem:[%s2454_s22 + $0x36] ss:$8 sm:$0x3] }
 0x149   : >> { %v830_v48 = vadd.f32 %v822_v25, %v782_v12  ;;  %v1068_v27 = vmul.f32 %v2943_v52, %v1030_v7  ;;  %v1074_v26 = vmul.f32 %v1598_v58, %v1072_v17  ;;  %v1125_v44 = vmul.f32 %v1604_v47, %v2952_v2 }
 0x14a   : >> { %v783_v41 = vadd.f32 %v766_v22, %v713_v51  ;;  %v1007_v36 = vrot.slane %v2950_v11, 7  ;;  %v1131_v28 = vmul.f32 %v1606_v31, %v1129_v5  ;;  %v2967_v13 = vrot.slane %v1166_v38, %v1050_v56  ;;  %v1616_v38 = vld [vmem:[%s2454_s22 + $0x56] ss:$8 sm:$0x3] }
 0x14b   : >> { %v900_v8 = vadd.f32 %v881_v39, %v830_v48  ;;  %v1076_v24 = vadd.f32 %v1074_v26, %v1068_v27  ;;  %v1186_v23 = vcombine.high %v2956_v53, %v2956_v53  ;;  %v1069_v45 = vmul.f32 %v1597_v57, %v2943_v52  ;;  %v1611_v57 = vld [vmem:[%s2454_s22 + $0x57] ss:$8 sm:$0x3] }
 0x14c   : >> { %v831_v22 = vadd.f32 %v823_v33, %v783_v41  ;;  %1027 = vst [vmem:[%s2692_s20 + $0x28] sm:$0xfe] %v1007_v36  ;;  %v1075_v32 = vmul.f32 %v1599_v1, %v1072_v17  ;;  %v1126_v56 = vmul.f32 %v1605_v9, %v2952_v2  ;;  %v1182_v34 = vmul.f32 %v1612_v40, %v2967_v13  ;;  %v1609_v17 = vld [vmem:[%s2454_s22 + $0x56] ss:$8 sm:$0x3] }
 0x14d   : >> { %v970_v59 = vadd.f32 %v951_v30, %v900_v8  ;;  %v1127_v20 = vadd.f32 %v1125_v44, %v1076_v24  ;;  %v1188_v60 = vmul.f32 %v1614_v35, %v1186_v23  ;;  %v3211_v25 = vlaneseq  ;;  %v1615_v30 = vld [vmem:[%s2454_s22 + $0x61] ss:$8 sm:$0x3]  ;;  %v1618_v26 = vld [vmem:[%s2454_s22 + $0x57] ss:$8 sm:$0x3] }
 0x14e   : >> { %v901_v39 = vadd.f32 %v884_v50, %v831_v22  ;;  %v1077_v19 = vadd.f32 %v1075_v32, %v1069_v45  ;;  %v1132_v0 = vmul.f32 %v1607_v42, %v1129_v5  ;;  %v1079_v29 = vmul.f32 %v1600_v3, %v2933_v63  ;;  %v3214_v40 = vld [vmem:[#allocation42_spill] sm:$0xff] }
 0x14f   : >> { %vm2988_vm3 = vcmp.lt.s32.totalorder %v3211_v25, 256  ;;  %v989_v61 = vadd.f32 %v2558_v21, %v970_v59  ;;  %v1133_v16 = vadd.f32 %v1131_v28, %v1127_v20  ;;  %v1183_v7 = vmul.f32 %v1613_v49, %v2967_v13  ;;  %v1603_v21 = vld [vmem:[%s2454_s22 + $0x37] ss:$8 sm:$0x3] }
 0x150   : >> { %v971_v50 = vadd.f32 %v954_v62, %v901_v39  ;;  %v1128_v43 = vadd.f32 %v1126_v56, %v1077_v19  ;;  %v1083_v58 = vmul.f32 %v1602_v4, %v2943_v52  ;;  %v1136_v10 = vmul.f32 %v1608_v14, %v2937_v37  ;;  %v1617_v28 = vld [vmem:[%s2454_s22 + $0x76] ss:$8 sm:$0x3] }
 0x151   : >> { %v1008_v15 = vrot.slane %v989_v61, 7  ;;  %v1184_v12 = vadd.f32 %v1182_v34, %v1133_v16  ;;  %v1189_v51 = vmul.f32 %v1615_v30, %v1186_v23  ;;  %v1140_v11 = vmul.f32 %v1610_v46, %v2952_v2  ;;  %v1619_v23 = vld [vmem:[%s2454_s22 + $0x77] ss:$8 sm:$0x3] }
 0x152   : >> { %v990_v62 = vadd.f32 %v2712_v6, %v971_v50  ;;  %v1134_v47 = vadd.f32 %v1132_v0, %v1128_v43  ;;  %v1085_v31 = vadd.f32 %v1083_v58, %v1079_v29  ;;  %v1080_v5 = vmul.f32 %v1601_v55, %v2933_v63 }
 0x153   : >> { %v1009_v48 = vsel %vm999_vm2, %v1006_v54, %v1008_v15  ;;  %v1190_v27 = vadd.f32 %v1188_v60, %v1184_v12  ;;  %v1084_v6 = vmul.f32 %v1603_v21, %v2943_v52  ;;  %v1193_v44 = vmul.f32 %v1616_v38, %v2956_v53 }
 0x154   : >> { %v1010_v41 = vrot.slane %v990_v62, 7  ;;  %1028 = vst [vmem:[%s2692_s20 + $0x30] sm:$0x7f] %v1009_v48  ;;  %v1185_v1 = vadd.f32 %v1183_v7, %v1134_v47  ;;  %v1138_v9 = vadd.f32 %v1136_v10, %v1085_v31  ;;  %v1137_v63 = vmul.f32 %v1609_v17, %v2937_v37 }
 0x155   : >> { %v1201_v54 = vadd.f32 %v1190_v27, %v3214_v40  ;;  %v1086_v8 = vadd.f32 %v1084_v6, %v1080_v5  ;;  %v1141_v22 = vmul.f32 %v1611_v57, %v2952_v2  ;;  %v1197_v35 = vmul.f32 %v1618_v26, %v2967_v13 }
 0x156   : >> { %v1011_v18 = vsel %vm999_vm2, %v1007_v36, %v1010_v41  ;;  %v1191_v24 = vadd.f32 %v1189_v51, %v1185_v1  ;;  %v1142_v52 = vadd.f32 %v1140_v11, %v1138_v9  ;;  %v1194_v36 = vmul.f32 %v1617_v28, %v2956_v53 }
 0x157   : >> { %1029 = vst [vmem:[%s2692_s20 + $0x38] sm:$0x7f] %v1011_v18  ;;  %1207 = vst.msk [vmem:[%s2692_s20] ss:$8 sm:$0x3] %vm2988_vm3, %v1201_v54  ;;  %v1139_v37 = vadd.f32 %v1137_v63, %v1086_v8  ;;  %v1198_v2 = vmul.f32 %v1619_v23, %v2967_v13 }
 0x158   : >> { %v1202_v42 = vadd.f32 %v1191_v24, %v3214_v40  ;;  %v1195_v45 = vadd.f32 %v1193_v44, %v1142_v52 }
 0x159   : >> { %v1143_v32 = vadd.f32 %v1141_v22, %v1139_v37 }
 0x15a   : >> { %1620 = vst.msk [vmem:[%s2692_s20 + $0x20] ss:$8 sm:$0x3] %vm2988_vm3, %v1202_v42  ;;  %v1199_v56 = vadd.f32 %v1197_v35, %v1195_v45 }
 0x15b   : >> { %v1196_v49 = vadd.f32 %v1194_v36, %v1143_v32 }
 0x15c   : >> { %v1212_v3 = vadd.f32 %v1199_v56, %v3214_v40 }
 0x15d   : >> { %v1200_v59 = vadd.f32 %v1198_v2, %v1196_v49  ;;  %404 = sbr.rel (!%p402_p5) target bundleno = 252 (0xfc), region = 172 }
 0x15e   : >> { %1621 = vst.msk [vmem:[%s2692_s20 + $0x17] ss:$8 sm:$0x3] %vm2988_vm3, %v1212_v3 }
 0x15f   : >> { %v1213_v39 = vadd.f32 %v1200_v59, %v3214_v40 }
 0x161   : >> { %1622 = vst.msk [vmem:[%s2692_s20 + $0x37] ss:$8 sm:$0x3] %vm2988_vm3, %v1213_v39 }
 0x162   : > { %1950 = shalt.err (!%p1947_p13)
}
 0x163   : > { %s1951_s25 = scalar_lea.hbm %s3049_s3, 2048  ;;  %s1955_s11 = scalar_lea.hbm %s3218_s10, 16384 }
 0x164   : > { %p1952_p2 = scmp.ne.s32.totalorder %s3049_s3, %s1951_s25  ;;  %p1956_p6 = scmp.lt.s32.totalorder %s3049_s3, %s3218_s10 }
 0x165   : > { %p1957_p8 = scmp.lt.s32.totalorder %s1955_s11, %s1951_s25 }
 0x166   : > { %p1953_p4 = pnand %p1952_p2, %p3222_p9 }
 0x167   : > { %p1958_p5 = por %p1957_p8, %p1956_p6 }
 0x168   : > { %p1954_p3 = pneg %p1953_p4 }
 0x16a   : > { %p1959_p10 = pnand %p1958_p5, %p1954_p3 }
 0x16c   : > { %1962 = shalt.err (!%p1959_p10)
}
 0x16d   : > { %s2057_s15 = smov 256   ;;  %s2058_s4 = smov 16  }
 0x16e   : > { %1659 = dma.vmem_to_hbm [thread:$0]  (%p3222_p9), %s3053_s14, 2048, %s3049_s3, %s3057_s17, %s2057_s15, %s2057_s15, %s2058_s4  }
 0x16f PF: > { %s3223_s24 = sld [smem:[#allocation32_spill]] }
 0x170   : > { %s3224_s6 = sld [smem:[#allocation27_spill]] }
 0x171   : > { %s3225_s16 = sld [smem:[#allocation36_spill]] }
 0x175   : > { %p1673_p0 = scmp.ge.s32.totalorder %s3223_s24, 2 }
 0x176   : > { %s1254_s22 = sand.u32 1, %s3224_s6  }
 0x177   : > { %p3226_p1 = scmp.ne.s32.totalorder %s3225_s16, 0  ;;  %s1255_s29 = scalar_lea.sflag [#allocation6], %s1254_s22 }
 0x179   : > { %p1666_p7 = pnand %p1673_p0, %p3226_p1 }
 0x17b   : > { %p1667_p11 = pneg %p1666_p7 }
 0x17d   : > { %2010 = dma.done.wait (%p1667_p11), %s1255_s29, 2048  }
 0x17e   : > { %2012 = vsyncadd (%p1667_p11), %s1255_s29, 4294965248  ;;  %s17_s19 = sadd.s32 1, %s3223_s24   ;;  %s3227_s12 = sld [smem:[#allocation28_spill]] }
 0x17f   : > { %p14_p12 = scmp.ge.s32.totalorder %s17_s19, 10   ;;  %s3228_s13 = sld [smem:[#allocation29_spill]] }
 0x180   : > { %s3229_s14 = sld [smem:[#allocation37_spill]] }
 0x181   : > { %s3230_s15 = sld [smem:[#allocation30_spill]]  ;;  %16 = sbr.rel (!%p14_p12) target bundleno = 10 (0xa), region = 183 }
 0x182   : > { %s3231_s16 = sld [smem:[#allocation31_spill]] }
 0x183   : > { %s3232_s17 = sld [smem:[#allocation33_spill]] }
 0x184   : > { %s3233_s18 = sld [smem:[#allocation35_spill]] }
 0x186   :  { %1260 = vsyncpa [#allocation5], 1 }
 0x187   :  { %1262 = vsyncpa [#allocation5 + $0x1], 1 }
 0x188   :  { %1263 = vsyncpa [#allocation6], 1 }
 0x189   :  { %1265 = vsyncpa [#allocation6 + $0x1], 1 }
 0x18a   :  { %1266 = vsyncmov [#allocation3] }
 0x18d   :  { %s1267_s20 = vpop.sfrf %1266 }
 0x18e   :  { %p1630_p9 = scmp.ne.s32.totalorder %s1267_s20, 0 }
 0x190   :  { %1271 = shalt.err (%p1630_p9)  }
 0x191   :  { %1273 = vsyncmov [#allocation3 + $0x1] }
 0x194   :  { %s1274_s28 = vpop.sfrf %1273 }
 0x195   :  { %p1631_p13 = scmp.ne.s32.totalorder %s1274_s28, 0 }
 0x197   :  { %1278 = shalt.err (%p1631_p13)  }
 0x198   :  { %1280 = vsyncmov [#allocation3 + $0x2] }
 0x19b   :  { %s1281_s9 = vpop.sfrf %1280 }
 0x19c   :  { %p1632_p2 = scmp.ne.s32.totalorder %s1281_s9, 0 }
 0x19e   :  { %1285 = shalt.err (%p1632_p2)  }
 0x19f   :  { %1287 = vsyncmov [#allocation3 + $0x3] }
 0x1a2   :  { %s1288_s26 = vpop.sfrf %1287 }
 0x1a3   :  { %p1633_p4 = scmp.ne.s32.totalorder %s1288_s26, 0 }
 0x1a5   :  { %1292 = shalt.err (%p1633_p4)  }
 0x1a6   :  { %1294 = vsyncmov [#allocation3 + $0x4] }
 0x1a9   :  { %s1295_s0 = vpop.sfrf %1294 }
 0x1aa   :  { %p1634_p3 = scmp.ne.s32.totalorder %s1295_s0, 0 }
 0x1ac   :  { %1299 = shalt.err (%p1634_p3)  }
 0x1ad   :  { %1301 = vsyncmov [#allocation3 + $0x5] }
 0x1b0   :  { %s1302_s19 = vpop.sfrf %1301 }
 0x1b1   :  { %p1635_p6 = scmp.ne.s32.totalorder %s1302_s19, 0 }
 0x1b3   :  { %1306 = shalt.err (%p1635_p6)  }

</bundles_post_ra>
